<compile_context>
chip_gen: v7x
topology: tpu7x:2x2x1
jax: 0.10.0
libtpu: 0.0.40
codegen_flags: <defaults>
</compile_context>

<pallas_src>
import functools

import jax
import jax.numpy as jnp
from jax.experimental import pallas as pl
from jax.experimental.pallas import tpu as pltpu


# -------------------- shared adjacency math (pure jnp, kernel-safe) ----------


def _normalized_adjacency(src, dst, ew, n):
    """Dense D^-1/2 (A + I) D^-1/2 for both convs, built from a padded edge list.

    src, dst : (1, EP) int32   edge endpoints (self loops appended, zero padded)
    ew       : (2, 1, EP) f32  edge weights; row 0 = conv1 (edge_attr), row 1 = conv2
               (unit weights); padded slots carry weight 0 so they contribute nothing.
    Returns (adj1, adj2), each (n, n) f32 indexed [target, source].
    Uses only ops with both a Mosaic and an interpret lowering (iota / compare / where /
    rsqrt / broadcast multiply / lane reduce).
    """
    ep = src.shape[-1]
    row = jax.lax.broadcasted_iota(jnp.int32, (n, ep), 0)
    oh_dst = (row == dst).astype(jnp.float32)          # (n, ep) one-hot over targets
    oh_src = (row == src).astype(jnp.float32)          # (n, ep) one-hot over sources

    def one(k):
        w_k = ew[k]                                               # (1, ep)
        deg = jnp.sum(oh_dst * w_k, axis=1, keepdims=True)        # (n, 1) in-degree
        dinv = jnp.where(deg > 0.0, jax.lax.rsqrt(deg), 0.0)      # (n, 1)
        lhs = (dinv * oh_dst) * w_k                               # (n, ep)
        rhs = dinv * oh_src                                       # (n, ep)
        # adj[t, s] = sum_e lhs[t, e] * rhs[s, e]; exact-f32 VPU reduce (no MXU pass,
        # identical numerics in kernel and reference regardless of matmul precision).
        return jnp.sum(lhs[:, None, :] * rhs[None, :, :], axis=-1)

    return one(0), one(1)


# ----------------------------- Pallas kernel ---------------------------------


def _gcn_kernel(*refs, training):
    if training:
        src_ref, dst_ref, ew_ref, x_ref, w_ref, b_ref, mask_ref, out_ref = refs
    else:
        src_ref, dst_ref, ew_ref, x_ref, w_ref, b_ref, out_ref = refs

    n = x_ref.shape[0]
    adj1, adj2 = _normalized_adjacency(src_ref[...], dst_ref[...], ew_ref[...], n)

    bf = lambda a: a.astype(jnp.bfloat16)

    # ---- conv1: (A_hat1 @ X) @ W1 + b1  (bf16 MXU feed, f32 accumulation) ----
    ax = jnp.dot(bf(adj1), bf(x_ref[...]), preferred_element_type=jnp.float32)
    h = jnp.dot(bf(ax), w_ref[0], preferred_element_type=jnp.float32) + b_ref[0]

    # ---- ReLU (+ inverted dropout p=0.5 in training: mask is pre-scaled 0.0/2.0) ----
    h = jnp.maximum(h, 0.0)
    if training:
        h = h * mask_ref[...]

    # ---- conv2: (A_hat2 @ H) @ W2 + b2 ----
    ah = jnp.dot(bf(adj2), bf(h), preferred_element_type=jnp.float32)
    out_ref[...] = jnp.dot(bf(ah), w_ref[1],
                           preferred_element_type=jnp.float32) + b_ref[1]


# ----------------------------- JAX glue --------------------------------------


def _padded_edge_count(e, n):
    return max(128, ((e + n + 127) // 128) * 128)


def _edge_inputs(edge_index, edge_attr, n, ep):
    """Padded edge list with self loops (weight 1) appended, matching gcn_norm defaults."""
    e = edge_index.shape[1]
    pad = ep - (e + n)
    loop = jnp.arange(n, dtype=jnp.int32)
    src = jnp.pad(jnp.concatenate([edge_index[0].astype(jnp.int32), loop]), (0, pad))
    dst = jnp.pad(jnp.concatenate([edge_index[1].astype(jnp.int32), loop]), (0, pad))
    ones_n = jnp.ones((n,), jnp.float32)
    w1 = jnp.concatenate([edge_attr.astype(jnp.float32), ones_n])   # conv1: edge_attr
    w2 = jnp.ones((e + n,), jnp.float32)                            # conv2: unit weights
    ew = jnp.stack([jnp.pad(w1, (0, pad)), jnp.pad(w2, (0, pad))])
    return src.reshape(1, ep), dst.reshape(1, ep), ew.reshape(2, 1, ep)


@functools.partial(jax.jit, static_argnames=("training",))
def gcn_prompt_learner(x, edge_index, edge_attr, w, b, drop_key=None, *, training=False):
    """Forward pass equivalent to GcnPromptLearner.forward(x, edge_index, edge_attr).

    w: (2, C, C) bf16 and b: (2, 1, C) f32 are produced ONCE by prepare_params().
    """
    n, c = x.shape
    e = edge_index.shape[1]
    ep = _padded_edge_count(e, n)
    src, dst, ew = _edge_inputs(edge_index, edge_attr, n, ep)

    inputs = [src, dst, ew, x.astype(jnp.float32), w, b]
    if training:
        # TODO(synk): dropout mask stream will not bitwise-match torch's RNG
        # (semantics — inverted dropout, p=0.5 — are preserved).
        keep = jax.random.bernoulli(drop_key, 0.5, (n, c))
        inputs.append(jnp.where(keep, 2.0, 0.0).astype(jnp.float32))

    vmem = pl.BlockSpec(memory_space=pltpu.MemorySpace.VMEM)
    flops = 4 * n * n * c + 4 * n * c * c + 4 * n * n * ep
    bytes_accessed = (4 * ep * 4 + n * c * 4 + w.size * 2 + b.size * 4
                      + n * c * 4 + (n * c * 4 if training else 0))

    return pl.pallas_call(
        functools.partial(_gcn_kernel, training=training),
        in_specs=[vmem] * len(inputs),
        out_specs=vmem,
        out_shape=jax.ShapeDtypeStruct((n, c), jnp.float32),
        cost_estimate=pl.CostEstimate(flops=flops,
                                      bytes_accessed=bytes_accessed,
                                      transcendentals=2 * n),
    )(*inputs)


def init_params(key, c_in=512, c_out=512):
    """Deterministic glorot-uniform weights (as torch_geometric GCNConv) and zero bias."""
    k1, k2 = jax.random.split(key)
    bound = (6.0 / (c_in + c_out)) ** 0.5
    w1 = jax.random.uniform(k1, (c_in, c_out), jnp.float32, -bound, bound)
    w2 = jax.random.uniform(k2, (c_in, c_out), jnp.float32, -bound, bound)
    return w1, jnp.zeros((c_out,), jnp.float32), w2, jnp.zeros((c_out,), jnp.float32)


def prepare_params(params):
    """One-time (outside jit) weight stack + bf16 cast: the per-call forward never
    re-reads/re-writes the 2 MiB of f32 weights again."""
    w1, b1, w2, b2 = params
    w = jnp.stack([w1, w2]).astype(jnp.bfloat16)                    # (2, C, C) bf16
    b = jnp.stack([b1, b2]).reshape(2, 1, -1).astype(jnp.float32)   # (2, 1, C) f32
    return jax.block_until_ready(w), jax.block_until_ready(b)


# ----------------------------- references ------------------------------------


def reference_recipe(x, edge_index, edge_attr, params):
    """Same numerical recipe as the kernel (bf16 MXU feeds, f32 accumulation)."""
    w1, b1, w2, b2 = params
    n, c = x.shape
    ep = _padded_edge_count(edge_index.shape[1], n)
    src, dst, ew = _edge_inputs(edge_index, edge_attr, n, ep)
    adj1, adj2 = _normalized_adjacency(src, dst, ew, n)
    bf = lambda a: a.astype(jnp.bfloat16)
    ax = jnp.dot(bf(adj1), bf(x), preferred_element_type=jnp.float32)
    h = jnp.dot(bf(ax), bf(w1), preferred_element_type=jnp.float32) + b1[None, :]
    h = jnp.maximum(h, 0.0)
    ah = jnp.dot(bf(adj2), bf(h), preferred_element_type=jnp.float32)
    return jnp.dot(bf(ah), bf(w2), preferred_element_type=jnp.float32) + b2[None, :]


def reference_f32(x, edge_index, edge_attr, params):
    """Pure-f32 math of the original torch module (eval mode, no quantization)."""
    w1, b1, w2, b2 = params
    n, c = x.shape
    ep = _padded_edge_count(edge_index.shape[1], n)
    src, dst, ew = _edge_inputs(edge_index, edge_attr, n, ep)
    adj1, adj2 = _normalized_adjacency(src, dst, ew, n)
    hp = jax.lax.Precision.HIGHEST
    h = jnp.dot(jnp.dot(adj1, x, precision=hp), w1, precision=hp) + b1[None, :]
    h = jnp.maximum(h, 0.0)
    return jnp.dot(jnp.dot(adj2, h, precision=hp), w2, precision=hp) + b2[None, :]


# ----------------------------- main -------------------------------------------


if __name__ == "__main__":
    key = jax.random.PRNGKey(0)
    k_param, k_x, k_edge, k_attr, k_drop = jax.random.split(key, 5)

    N = 16        # number of graph nodes (small)
    C = 512       # GCNConv(512, 512) as in the module
    E = 32        # number of edges

    params = init_params(k_param, C, C)
    x = jax.random.normal(k_x, (N, C), jnp.float32)
    edge_index = jax.random.randint(k_edge, (2, E), 0, N, dtype=jnp.int32)
    edge_attr = jax.random.uniform(k_attr, (E,), jnp.float32, 0.1, 1.0)

    # One-time weight prep (review item 1): stacked bf16 weights + f32 bias.
    w, b = prepare_params(params)

    # Module is constructed with traing=False -> F.dropout is a no-op.
    out = gcn_prompt_learner(x, edge_index, edge_attr, w, b, training=False)
    out = jax.block_until_ready(out)

    # 1) kernel implements its numerical recipe exactly (tight check)
    ref_q = reference_recipe(x, edge_index, edge_attr, params)
    # 2) bf16-feed recipe stays close to the pure-f32 module math (loose check)
    ref_f = reference_f32(x, edge_index, edge_attr, params)

    assert out.shape == (N, C) and out.dtype == jnp.float32
    assert jnp.allclose(out, ref_q, rtol=1e-3, atol=1e-3), float(
        jnp.max(jnp.abs(out - ref_q)))
    assert jnp.allclose(out, ref_f, rtol=5e-2, atol=5e-2), float(
        jnp.max(jnp.abs(out - ref_f)))

    # Exercise the training path (dropout mask generated host-side, interpret-safe).
    out_tr = gcn_prompt_learner(x, edge_index, edge_attr, w, b, k_drop, training=True)
    out_tr = jax.block_until_ready(out_tr)
    assert out_tr.shape == (N, C) and bool(jnp.all(jnp.isfinite(out_tr)))

    print("KERNEL_OK")
</pallas_src>

<mosaic_0001>
module attributes {stable_mosaic.version = 11 : i64} {
  func.func @_gcn_kernel(%arg0: memref<1x128xi32, #tpu.memory_space<vmem>>, %arg1: memref<1x128xi32, #tpu.memory_space<vmem>>, %arg2: memref<2x1x128xf32, #tpu.memory_space<vmem>>, %arg3: memref<16x512xf32, #tpu.memory_space<vmem>>, %arg4: memref<2x512x512xbf16, #tpu.memory_space<vmem>>, %arg5: memref<2x1x512xf32, #tpu.memory_space<vmem>>, %arg6: memref<16x512xf32, #tpu.memory_space<vmem>>) attributes {dimension_semantics = [], scalar_prefetch = 0 : i64, scratch_operands = 0 : i64, tpu.core_type = #tpu.core_type<tc>} {
    %c0 = arith.constant 0 : index
    %c0_0 = arith.constant 0 : index
    %0 = vector.load %arg0[%c0, %c0_0] : memref<1x128xi32, #tpu.memory_space<vmem>>, vector<1x128xi32>
    %c0_1 = arith.constant 0 : index
    %c0_2 = arith.constant 0 : index
    %1 = vector.load %arg1[%c0_1, %c0_2] : memref<1x128xi32, #tpu.memory_space<vmem>>, vector<1x128xi32>
    %c0_3 = arith.constant 0 : index
    %c0_4 = arith.constant 0 : index
    %c0_5 = arith.constant 0 : index
    %2 = vector.load %arg2[%c0_3, %c0_4, %c0_5] : memref<2x1x128xf32, #tpu.memory_space<vmem>>, vector<2x1x128xf32>
    %3 = tpu.iota {dimensions = array<i32: 0>} : vector<16x128xi32>
    %4 = vector.broadcast %1 : vector<1x128xi32> to vector<16x128xi32>
    %5 = arith.cmpi eq, %3, %4 : vector<16x128xi32>
    %6 = arith.extui %5 : vector<16x128xi1> to vector<16x128xi32>
    %7 = arith.sitofp %6 : vector<16x128xi32> to vector<16x128xf32>
    %8 = vector.broadcast %0 : vector<1x128xi32> to vector<16x128xi32>
    %9 = arith.cmpi eq, %3, %8 : vector<16x128xi32>
    %10 = arith.extui %9 : vector<16x128xi1> to vector<16x128xi32>
    %11 = arith.sitofp %10 : vector<16x128xi32> to vector<16x128xf32>
    %12 = vector.extract_strided_slice %2 {offsets = [0, 0, 0], sizes = [1, 1, 128], strides = [1, 1, 1]} : vector<2x1x128xf32> to vector<1x1x128xf32>
    %13 = vector.shape_cast %12 : vector<1x1x128xf32> to vector<1x128xf32>
    %14 = vector.broadcast %13 : vector<1x128xf32> to vector<16x128xf32>
    %15 = arith.mulf %7, %14 : vector<16x128xf32>
    %cst = arith.constant dense<0.000000e+00> : vector<16xf32>
    %16 = vector.multi_reduction <add>, %15, %cst [1] : vector<16x128xf32> to vector<16xf32>
    %17 = vector.shape_cast %16 : vector<16xf32> to vector<16x1xf32>
    %cst_6 = arith.constant 0.000000e+00 : f32
    %18 = vector.broadcast %cst_6 : f32 to vector<16x1xf32>
    %19 = arith.cmpf ogt, %17, %18 : vector<16x1xf32>
    %20 = math.rsqrt %17 : vector<16x1xf32>
    %cst_7 = arith.constant 0.000000e+00 : f32
    %21 = vector.broadcast %cst_7 : f32 to vector<16x1xf32>
    %22 = arith.select %19, %20, %21 : vector<16x1xi1>, vector<16x1xf32>
    %23 = vector.broadcast %22 : vector<16x1xf32> to vector<16x128xf32>
    %24 = arith.mulf %23, %7 : vector<16x128xf32>
    %25 = vector.broadcast %13 : vector<1x128xf32> to vector<16x128xf32>
    %26 = arith.mulf %24, %25 : vector<16x128xf32>
    %27 = vector.broadcast %22 : vector<16x1xf32> to vector<16x128xf32>
    %28 = arith.mulf %27, %11 : vector<16x128xf32>
    %29 = vector.shape_cast %26 : vector<16x128xf32> to vector<16x1x128xf32>
    %30 = vector.shape_cast %28 : vector<16x128xf32> to vector<1x16x128xf32>
    %31 = vector.broadcast %29 : vector<16x1x128xf32> to vector<16x16x128xf32>
    %32 = vector.broadcast %30 : vector<1x16x128xf32> to vector<16x16x128xf32>
    %33 = arith.mulf %31, %32 : vector<16x16x128xf32>
    %cst_8 = arith.constant dense<0.000000e+00> : vector<16x16xf32>
    %34 = vector.multi_reduction <add>, %33, %cst_8 [2] : vector<16x16x128xf32> to vector<16x16xf32>
    %35 = vector.extract_strided_slice %2 {offsets = [1, 0, 0], sizes = [1, 1, 128], strides = [1, 1, 1]} : vector<2x1x128xf32> to vector<1x1x128xf32>
    %36 = vector.shape_cast %35 : vector<1x1x128xf32> to vector<1x128xf32>
    %37 = vector.broadcast %36 : vector<1x128xf32> to vector<16x128xf32>
    %38 = arith.mulf %7, %37 : vector<16x128xf32>
    %cst_9 = arith.constant dense<0.000000e+00> : vector<16xf32>
    %39 = vector.multi_reduction <add>, %38, %cst_9 [1] : vector<16x128xf32> to vector<16xf32>
    %40 = vector.shape_cast %39 : vector<16xf32> to vector<16x1xf32>
    %cst_10 = arith.constant 0.000000e+00 : f32
    %41 = vector.broadcast %cst_10 : f32 to vector<16x1xf32>
    %42 = arith.cmpf ogt, %40, %41 : vector<16x1xf32>
    %43 = math.rsqrt %40 : vector<16x1xf32>
    %cst_11 = arith.constant 0.000000e+00 : f32
    %44 = vector.broadcast %cst_11 : f32 to vector<16x1xf32>
    %45 = arith.select %42, %43, %44 : vector<16x1xi1>, vector<16x1xf32>
    %46 = vector.broadcast %45 : vector<16x1xf32> to vector<16x128xf32>
    %47 = arith.mulf %46, %7 : vector<16x128xf32>
    %48 = vector.broadcast %36 : vector<1x128xf32> to vector<16x128xf32>
    %49 = arith.mulf %47, %48 : vector<16x128xf32>
    %50 = vector.broadcast %45 : vector<16x1xf32> to vector<16x128xf32>
    %51 = arith.mulf %50, %11 : vector<16x128xf32>
    %52 = vector.shape_cast %49 : vector<16x128xf32> to vector<16x1x128xf32>
    %53 = vector.shape_cast %51 : vector<16x128xf32> to vector<1x16x128xf32>
    %54 = vector.broadcast %52 : vector<16x1x128xf32> to vector<16x16x128xf32>
    %55 = vector.broadcast %53 : vector<1x16x128xf32> to vector<16x16x128xf32>
    %56 = arith.mulf %54, %55 : vector<16x16x128xf32>
    %cst_12 = arith.constant dense<0.000000e+00> : vector<16x16xf32>
    %57 = vector.multi_reduction <add>, %56, %cst_12 [2] : vector<16x16x128xf32> to vector<16x16xf32>
    %58 = arith.truncf %34 : vector<16x16xf32> to vector<16x16xbf16>
    %c0_13 = arith.constant 0 : index
    %c0_14 = arith.constant 0 : index
    %59 = vector.load %arg3[%c0_13, %c0_14] : memref<16x512xf32, #tpu.memory_space<vmem>>, vector<16x512xf32>
    %60 = arith.truncf %59 : vector<16x512xf32> to vector<16x512xbf16>
    %cst_15 = arith.constant dense<0.000000e+00> : vector<16x512xf32>
    %61 = tpu.matmul %58, %60, %cst_15 {dimension_numbers = #tpu.dot_dimension_numbers<[1], [0], [0], [1], [0, 0, 1, 1], [], []>} : vector<16x16xbf16>, vector<16x512xbf16>, vector<16x512xf32> -> vector<16x512xf32>
    %62 = arith.truncf %61 : vector<16x512xf32> to vector<16x512xbf16>
    %c0_16 = arith.constant 0 : index
    %c0_17 = arith.constant 0 : index
    %c0_18 = arith.constant 0 : index
    %63 = vector.load %arg4[%c0_16, %c0_17, %c0_18] : memref<2x512x512xbf16, #tpu.memory_space<vmem>>, vector<1x512x512xbf16>
    %64 = vector.shape_cast %63 : vector<1x512x512xbf16> to vector<512x512xbf16>
    %cst_19 = arith.constant dense<0.000000e+00> : vector<16x512xf32>
    %65 = tpu.matmul %62, %64, %cst_19 {dimension_numbers = #tpu.dot_dimension_numbers<[1], [0], [0], [1], [0, 0, 1, 1], [], []>} : vector<16x512xbf16>, vector<512x512xbf16>, vector<16x512xf32> -> vector<16x512xf32>
    %c0_20 = arith.constant 0 : index
    %c0_21 = arith.constant 0 : index
    %c0_22 = arith.constant 0 : index
    %66 = vector.load %arg5[%c0_20, %c0_21, %c0_22] : memref<2x1x512xf32, #tpu.memory_space<vmem>>, vector<1x1x512xf32>
    %67 = vector.shape_cast %66 : vector<1x1x512xf32> to vector<1x512xf32>
    %68 = vector.broadcast %67 : vector<1x512xf32> to vector<16x512xf32>
    %69 = arith.addf %65, %68 : vector<16x512xf32>
    %cst_23 = arith.constant 0.000000e+00 : f32
    %70 = vector.broadcast %cst_23 : f32 to vector<16x512xf32>
    %71 = arith.maximumf %69, %70 : vector<16x512xf32>
    %72 = arith.truncf %57 : vector<16x16xf32> to vector<16x16xbf16>
    %73 = arith.truncf %71 : vector<16x512xf32> to vector<16x512xbf16>
    %cst_24 = arith.constant dense<0.000000e+00> : vector<16x512xf32>
    %74 = tpu.matmul %72, %73, %cst_24 {dimension_numbers = #tpu.dot_dimension_numbers<[1], [0], [0], [1], [0, 0, 1, 1], [], []>} : vector<16x16xbf16>, vector<16x512xbf16>, vector<16x512xf32> -> vector<16x512xf32>
    %75 = arith.truncf %74 : vector<16x512xf32> to vector<16x512xbf16>
    %c1 = arith.constant 1 : index
    %c0_25 = arith.constant 0 : index
    %c0_26 = arith.constant 0 : index
    %76 = vector.load %arg4[%c1, %c0_25, %c0_26] : memref<2x512x512xbf16, #tpu.memory_space<vmem>>, vector<1x512x512xbf16>
    %77 = vector.shape_cast %76 : vector<1x512x512xbf16> to vector<512x512xbf16>
    %cst_27 = arith.constant dense<0.000000e+00> : vector<16x512xf32>
    %78 = tpu.matmul %75, %77, %cst_27 {dimension_numbers = #tpu.dot_dimension_numbers<[1], [0], [0], [1], [0, 0, 1, 1], [], []>} : vector<16x512xbf16>, vector<512x512xbf16>, vector<16x512xf32> -> vector<16x512xf32>
    %c1_28 = arith.constant 1 : index
    %c0_29 = arith.constant 0 : index
    %c0_30 = arith.constant 0 : index
    %79 = vector.load %arg5[%c1_28, %c0_29, %c0_30] : memref<2x1x512xf32, #tpu.memory_space<vmem>>, vector<1x1x512xf32>
    %80 = vector.shape_cast %79 : vector<1x1x512xf32> to vector<1x512xf32>
    %81 = vector.broadcast %80 : vector<1x512xf32> to vector<16x512xf32>
    %82 = arith.addf %78, %81 : vector<16x512xf32>
    %c0_31 = arith.constant 0 : index
    %c0_32 = arith.constant 0 : index
    %83 = vector.load %arg6[%c0_31, %c0_32] : memref<16x512xf32, #tpu.memory_space<vmem>>, vector<16x512xf32>
    tpu.vector_store %arg6[%c0_31, %c0_32], %82 {strides = array<i32>} : memref<16x512xf32, #tpu.memory_space<vmem>>, vector<16x512xf32>,
    return
  }
}

</mosaic_0001>

<bundles_post_ra>
// kernel: gcn_prompt_learner.1
= control target key start
LH: loop header
LB: loop body
LE: loop exit
PB: predicated region body
PF: predicated region fallthrough
CT: control target
= control target key end

     0   :  { %11 = vsyncpa [#allocation3], 0  ;;  %s4515_s0 = inlined_call_operand.vmem [shape: s32[1,128], index: 0, kind: input, shape index: {}]   ;;  %s4516_s1 = inlined_call_operand.vmem [shape: s32[1,128], index: 1, kind: input, shape index: {}]   ;;  %s4517_s2 = inlined_call_operand.vmem [shape: f32[2,1,128], index: 2, kind: input, shape index: {}]   ;;  %s4518_s3 = inlined_call_operand.hbm [shape: f32[16,512], index: 3, kind: input, shape index: {}]   ;;  %s4519_s4 = inlined_call_operand.hbm [shape: bf16[2,512,512], index: 4, kind: input, shape index: {}]   ;;  %s4520_s5 = inlined_call_operand.vmem [shape: f32[2,1,512], index: 5, kind: input, shape index: {}]   ;;  %s4521_s6 = inlined_call_operand.hbm [shape: f32[16,512], index: 6, kind: output, shape index: {}]  }
   0x1   :  { %12 = vsyncpa [#allocation6], 0 }
   0x2   :  { %13 = vsyncpa [#allocation4], 0  ;;  %s4075_s21 = smov [#allocation2]   ;;  %s4003_s25 = scalar_lea.hbm %s4518_s3, 1024 }
   0x3   :  { %s25_s22 = sshll.u32 %s4075_s21, 4  ;;  %p4004_p0 = scmp.ne.s32.totalorder %s4518_s3, %s4003_s25  ;;  %s26_s22 = int_to_ptr.vmem [resolvable:$true] %s25_s22 }
   0x4   :  { %p4007_p1 = scmp.lt.u32.totalorder %s4003_s25, %s4518_s3 }
   0x6   :  { %p4009_p2 = pnand %p4007_p1, %p4004_p0 }
   0x8   :  { %4012 = shalt.err (!%p4009_p2)
}
   0x9   :  { %s4013_s30 = scalar_lea.vmem %s26_s22, 1024  ;;  %p4018_p4 = scmp.lt.s32.totalorder %s26_s22, %s26_s22 }
   0xa   :  { %p4014_p3 = scmp.ne.s32.totalorder %s26_s22, %s4013_s30  ;;  %p4019_p5 = scmp.lt.s32.totalorder %s4013_s30, %s4013_s30 }
   0xc   :  { %p4020_p6 = por %p4019_p5, %p4018_p4 }
   0xe   :  { %p4021_p7 = pnand %p4020_p6, %p4014_p3 }
  0x10   :  { %4024 = shalt.err (!%p4021_p7)
}
  0x11   :  { %s4076_s7 = smov 512   ;;  %s4077_s8 = smov 32  }
  0x12   :  { %31 = dma.hbm_to_vmem [thread:$0]  %s4518_s3, 1024, %s26_s22, [#allocation3], %s4076_s7, %s4076_s7, %s4077_s8  }
  0x13   :  { %s4078_s11 = smov [#allocation5]   ;;  %s4025_s15 = scalar_lea.hbm %s4519_s4, 32768 }
  0x14   :  { %s37_s12 = sshll.u32 %s4078_s11, 4  ;;  %p4026_p8 = scmp.ne.s32.totalorder %s4519_s4, %s4025_s15  ;;  %s38_s12 = int_to_ptr.vmem [resolvable:$true] %s37_s12 }
  0x15   :  { %p4029_p9 = scmp.lt.u32.totalorder %s4025_s15, %s4519_s4 }
  0x17   :  { %p4031_p10 = pnand %p4029_p9, %p4026_p8 }
  0x19   :  { %4034 = shalt.err (!%p4031_p10)
}
  0x1a   :  { %s4035_s20 = scalar_lea.vmem %s38_s12, 32768  ;;  %p4040_p12 = scmp.lt.s32.totalorder %s38_s12, %s38_s12 }
  0x1b   :  { %p4036_p11 = scmp.ne.s32.totalorder %s38_s12, %s4035_s20  ;;  %p4041_p13 = scmp.lt.s32.totalorder %s4035_s20, %s4035_s20 }
  0x1d   :  { %p4042_p0 = por %p4041_p13, %p4040_p12 }
  0x1f   :  { %p4043_p1 = pnand %p4042_p0, %p4036_p11 }
  0x21   :  { %4046 = shalt.err (!%p4043_p1)
}
  0x22   :  { %s4079_s3 = smov 256   ;;  %s4080_s21 = smov 16  }
  0x23   :  { %43 = dma.hbm_to_vmem [thread:$0]  %s4519_s4, 32768, %s38_s12, [#allocation6], %s4079_s3, %s4079_s3, %s4080_s21  }
  0x24   :  { %4069 = dma.done.wait [#allocation3], 1024  }
  0x25   :  { %4070 = vsyncadd [#allocation3], 4294966272 }
  0x26   :  { %4071 = dma.done.wait [#allocation6], 32768  }
  0x27   :  { %4072 = vsyncadd [#allocation6], 4294934528  ;;  %v57_v0 = vlaneseq  ;;  %v3300_v3 = vld [vmem:[%s4516_s1] ss:$0 sm:$0xff]  ;;  %v4081_v5 = vmov 0.0   ;;  %vm767_vm6 = vcmask 130112  }
  0x28   :  { %v3306_v4 = vld [vmem:[%s4517_s2] ss:$0 sm:$0xff]  ;;  %v4082_v14 = vmov 1966171168   ;;  %vm904_vm7 = vcmask 1041409   ;;  %vm906_vm8 = vcmask 1042434  }
  0x29   :  { %v4148_v1 = vshrl.u32 %v57_v0, 7  ;;  %v3303_v10 = vld [vmem:[%s4515_s0] ss:$0 sm:$0xff]  ;;  %v108_v15 = vunpack.c.l.s4 %v4082_v14  ;;  %vm908_vm9 = vcmask 1043459   ;;  %vm910_vm10 = vcmask 1044484   ;;  %s4084_s10 = smov [#allocation7]  }
  0x2a   :  { %vm912_vm11 = vcmask 1045509   ;;  %vm914_vm12 = vcmask 1046534   ;;  %vm916_vm13 = vcmask 1047559   ;;  %vm926_vm14 = vcmask 130048   ;;  %s3287_s11 = sshll.u32 %s4084_s10, 4  ;;  %s3288_s11 = int_to_ptr.vmem [resolvable:$true] %s3287_s11 }
  0x2b   :  { %v59_v2 = vadd.s32 8, %v4148_v1  ;;  %vm64_vm0 = vcmp.eq.s32.totalorder %v4148_v1, %v3300_v3  ;;  %v109_v16 = vunpack.c.0.s8 %v108_v15  ;;  %vm74_vm4 = vcmp.eq.s32.totalorder %v4148_v1, %v3303_v10  ;;  %p4052_p3 = scmp.lt.s32.totalorder %s3288_s11, %s3288_s11 }
  0x2c   :  { %v4158_v6 = vsel %vm64_vm0, 1.0, %v4081_v5  ;;  %v4175_v24 = vsub.s32 0, %v4148_v1  ;;  %v4179_v27 = vsel %vm74_vm4, 1.0, %v4081_v5 }
  0x2d   :  { %vm65_vm1 = vcmp.eq.s32.totalorder %v59_v2, %v3300_v3  ;;  %v86_v8 = vmul.f32 %v3306_v4, %v4158_v6  ;;  %vm75_vm2 = vcmp.eq.s32.totalorder %v59_v2, %v3303_v10  ;;  %v4170_v19 = vsub.s32 %v109_v16, %v4148_v1 }
  0x2e   :  { %v4160_v7 = vsel %vm65_vm1, 1.0, %v4081_v5  ;;  %v4167_v11 = vsel %vm75_vm2, 1.0, %v4081_v5 }
  0x2f   :  { %88 = vadd.xlane.f32.xlu0 %v86_v8  ;;  %v87_v9 = vmul.f32 %v3306_v4, %v4160_v7 }
  0x33   :  { %90 = vadd.xlane.f32.xlu0 %v87_v9 }
  0xbc   :  { %v89_v12 = vpop.xlane.xlu0 %88 }
  0xbd   :  { %3995 = vrsqrt.f32 %v89_v12  ;;  %vm92_vm3 = vcmp.gt.f32.partialorder %v89_v12, 0.0 }
  0xc0   :  { %v91_v13 = vpop.xlane.xlu0 %90 }
  0xc1   :  { %3997 = vrsqrt.f32 %v91_v13  ;;  %vm93_vm5 = vcmp.gt.f32.partialorder %v91_v13, 0.0 }
  0xc7   :  { %v3996_v17 = vpop.eup %3995 }
  0xc8   :  { %v96_v18 = vsel %vm92_vm3, %v3996_v17, 0.0 }
  0xc9   :  { %v98_v20 = vmul.f32 %v4158_v6, %v96_v18  ;;  %v4183_v31 = vmul.f32 %v4179_v27, %v96_v18 }
  0xcb   :  { %v3998_v21 = vpop.eup %3997  ;;  %v100_v22 = vmul.f32 %v3306_v4, %v98_v20 }
  0xcc   :  { %v97_v23 = vsel %vm93_vm5, %v3998_v21, 0.0 }
  0xcd   :  { %v99_v25 = vmul.f32 %v4160_v7, %v97_v23  ;;  %v113_v26 = vrot.slane %v100_v22, %v4170_v19  ;;  %v4191_v38 = vmul.f32 %v4167_v11, %v97_v23  ;;  %v106_v44 = vcombine.high %v100_v22, %v100_v22 }
  0xcf   :  { %v101_v28 = vmul.f32 %v3306_v4, %v99_v25  ;;  %v129_v29 = vrot.slane %v113_v26, %v4170_v19  ;;  %v121_v30 = vcombine.high %v113_v26, %v113_v26  ;;  %v120_v50 = vrot.slane %v106_v44, %v4170_v19 }
  0xd1   :  { %v207_v32 = vrot.slane %v129_v29, %v4175_v24  ;;  %v162_v33 = vrot.slane %v101_v28, %v4170_v19  ;;  %v143_v36 = vrot.slane %v121_v30, %v4170_v19  ;;  %v151_v48 = vcombine.high %v129_v29, %v129_v29 }
  0xd2   :  { %v155_v49 = vcombine.high %v101_v28, %v101_v28  ;;  %v136_v55 = vrot.slane %v120_v50, %v4170_v19  ;;  %v122_v13 = vcombine.high %v120_v50, %v120_v50  ;;  %v697_v50 = vld [vmem:[#allocation2 + $0x8] sm:$0xff] }
  0xd3   :  { %v284_v34 = vmul.f32 %v207_v32, %v4183_v31  ;;  %v178_v35 = vrot.slane %v162_v33, %v4170_v19  ;;  %v170_v37 = vcombine.high %v162_v33, %v162_v33  ;;  %v285_v41 = vmul.f32 %v207_v32, %v4191_v38 }
  0xd4   :  { %v211_v42 = vrot.slane %v143_v36, %v4175_v24  ;;  %v215_v53 = vrot.slane %v151_v48, %v4175_v24  ;;  %v169_v59 = vrot.slane %v155_v49, %v4170_v19  ;;  %v223_v62 = vrot.slane %v136_v55, %v4175_v24 }
  0xd5   :  { %316 = vadd.xlane.f32.xlu1 %v284_v34  ;;  %v239_v39 = vrot.slane %v178_v35, %v4175_v24  ;;  %v192_v43 = vrot.slane %v170_v37, %v4170_v19  ;;  %v200_v54 = vcombine.high %v178_v35, %v178_v35  ;;  %v153_v5 = vcombine.high %v143_v36, %v143_v36 }
  0xd6   :  { %v286_v45 = vmul.f32 %v211_v42, %v4183_v31  ;;  %v287_v52 = vmul.f32 %v211_v42, %v4191_v38  ;;  %v288_v56 = vmul.f32 %v215_v53, %v4183_v31  ;;  %v289_v61 = vmul.f32 %v215_v53, %v4191_v38 }
  0xd7   :  { %v300_v40 = vmul.f32 %v239_v39, %v4183_v31  ;;  %v301_v46 = vmul.f32 %v239_v39, %v4191_v38  ;;  %v243_v47 = vrot.slane %v192_v43, %v4175_v24  ;;  %v247_v58 = vrot.slane %v200_v54, %v4175_v24  ;;  %v703_v54 = vld [vmem:[#allocation2 + $0x38] sm:$0xff] }
  0xd8   :  { %v185_v63 = vrot.slane %v169_v59, %v4170_v19  ;;  %v292_v2 = vmul.f32 %v223_v62, %v4183_v31  ;;  %v202_v8 = vcombine.high %v192_v43, %v192_v43  ;;  %v293_v10 = vmul.f32 %v223_v62, %v4191_v38  ;;  %v3613_v62 = vld [vmem:[#allocation5 + $0x4] ss:$16 sps:$4 sm:$0xff]  }
  0xd9   :  { %348 = vadd.xlane.f32.xlu0 %v300_v40  ;;  %318 = vadd.xlane.f32.xlu1 %v285_v41  ;;  %v302_v51 = vmul.f32 %v243_v47, %v4183_v31  ;;  %v303_v57 = vmul.f32 %v243_v47, %v4191_v38  ;;  %v304_v60 = vmul.f32 %v247_v58, %v4183_v31 }
  0xda   :  { %v305_v3 = vmul.f32 %v247_v58, %v4191_v38  ;;  %v255_v4 = vrot.slane %v185_v63, %v4175_v24  ;;  %v219_v12 = vrot.slane %v153_v5, %v4175_v24  ;;  %v251_v14 = vrot.slane %v202_v8, %v4175_v24 }
  0xdb   :  { %v150_v17 = vrot.slane %v122_v13, %v4170_v19  ;;  %v171_v18 = vcombine.high %v169_v59, %v169_v59  ;;  %v152_v29 = vcombine.high %v136_v55, %v136_v55  ;;  %v201_v34 = vcombine.high %v185_v63, %v185_v63  ;;  %v696_v55 = vld [vmem:[#allocation2] sm:$0xff]  ;;  %v698_v59 = vld [vmem:[#allocation2 + $0x10] sm:$0xff] }
  0xdc   :  { %v308_v9 = vmul.f32 %v255_v4, %v4183_v31  ;;  %v290_v15 = vmul.f32 %v219_v12, %v4183_v31  ;;  %v309_v16 = vmul.f32 %v255_v4, %v4191_v38  ;;  %v306_v20 = vmul.f32 %v251_v14, %v4183_v31 }
  0xdd   :  { %320 = vadd.xlane.f32.xlu0 %v286_v45  ;;  %350 = vadd.xlane.f32.xlu1 %v301_v46  ;;  %v291_v21 = vmul.f32 %v219_v12, %v4191_v38  ;;  %v227_v22 = vrot.slane %v150_v17, %v4175_v24  ;;  %v199_v23 = vrot.slane %v171_v18, %v4170_v19 }
  0xde   :  { %v307_v26 = vmul.f32 %v251_v14, %v4191_v38  ;;  %v231_v33 = vrot.slane %v152_v29, %v4175_v24  ;;  %v263_v37 = vrot.slane %v201_v34, %v4175_v24  ;;  %v154_v39 = vcombine.high %v150_v17, %v150_v17 }
  0xdf   :  { %v294_v25 = vmul.f32 %v227_v22, %v4183_v31  ;;  %v259_v28 = vrot.slane %v199_v23, %v4175_v24  ;;  %v295_v32 = vmul.f32 %v227_v22, %v4191_v38  ;;  %v203_v43 = vcombine.high %v199_v23, %v199_v23 }
  0xe0   :  { %v296_v35 = vmul.f32 %v231_v33, %v4183_v31  ;;  %v312_v40 = vmul.f32 %v263_v37, %v4183_v31  ;;  %v297_v41 = vmul.f32 %v231_v33, %v4191_v38  ;;  %v235_v42 = vrot.slane %v154_v39, %v4175_v24 }
  0xe1   :  { %352 = vadd.xlane.f32.xlu0 %v302_v51  ;;  %322 = vadd.xlane.f32.xlu1 %v287_v52  ;;  %v310_v30 = vmul.f32 %v259_v28, %v4183_v31  ;;  %v311_v36 = vmul.f32 %v259_v28, %v4191_v38  ;;  %v313_v45 = vmul.f32 %v263_v37, %v4191_v38  ;;  %v701_v51 = vld [vmem:[#allocation2 + $0x28] sm:$0xff]  ;;  %v699_v52 = vld [vmem:[#allocation2 + $0x18] sm:$0xff]  ;;  %v757_v29 = vand.u32 127, %v57_v0 }
  0xe2   :  { %v298_v44 = vmul.f32 %v235_v42, %v4183_v31  ;;  %v267_v46 = vrot.slane %v203_v43, %v4175_v24  ;;  %v299_v48 = vmul.f32 %v235_v42, %v4191_v38  ;;  %v705_v53 = vpack.c.bf16 %v701_v51, %v697_v50 }
  0xe3   :  { %v762_v37 = vadd.s32 4294967288, %v757_v29 }
  0xe4   :  { %v314_v47 = vmul.f32 %v267_v46, %v4183_v31  ;;  %v315_v49 = vmul.f32 %v267_v46, %v4191_v38  ;;  %v707_v31 = vpack.c.bf16 %v703_v54, %v699_v52  ;;  %930 = vmatprep.subr.bf16.mxu0 %v705_v53  ;;  %v4251_v38 = vld [vmem:[%s4517_s2 + $0x1] ss:$0 sm:$0xff] }
  0xe5   :  { %324 = vadd.xlane.f32.xlu0 %v288_v56  ;;  %354 = vadd.xlane.f32.xlu1 %v303_v57  ;;  %v700_v56 = vld [vmem:[#allocation2 + $0x20] sm:$0xff]  ;;  %v4083_v57 = vmov 0   ;;  %v386_v63 = vmul.f32 %v4251_v38, %v4158_v6  ;;  %v4262_v50 = vsub.s32 %v762_v37, %v4148_v1 }
  0xe6   :  { %962 = vmatprep.mubr.bf16.mxu0 %v4083_v57  ;;  %1005 = vmatprep.mubr.bf16.mxu1 %v4083_v57  ;;  %v704_v58 = vpack.c.bf16 %v700_v56, %v696_v55 }
  0xe7   :  { %973 = vmatprep.subr.bf16.mxu1 %v707_v31 }
  0xe8   :  { %931 = vmatpush1.bf16.msra.mxu0 %v704_v58 }
  0xe9   :  { %356 = vadd.xlane.f32.xlu0 %v304_v60  ;;  %326 = vadd.xlane.f32.xlu1 %v289_v61  ;;  %v702_v60 = vld [vmem:[#allocation2 + $0x30] sm:$0xff] }
  0xea   :  { %v706_v61 = vpack.c.bf16 %v702_v60, %v698_v59  ;;  %1810 = vmatprep.subr.bf16.mxu0 %v3613_v62 }
  0xec   :  { %974 = vmatpush1.bf16.msra.mxu1 %v706_v61 }
  0xed   :  { %332 = vadd.xlane.f32.xlu0 %v292_v2  ;;  %358 = vadd.xlane.f32.xlu1 %v305_v3  ;;  %v387_v2 = vmul.f32 %v4251_v38, %v4160_v7  ;;  %v3616_v3 = vld [vmem:[#allocation5 + $0xc] ss:$16 sps:$4 sm:$0xff]  }
  0xee   :  { %1896 = vmatprep.subr.bf16.mxu1 %v3616_v3 }
  0xf1   :  { %364 = vadd.xlane.f32.xlu0 %v308_v9  ;;  %334 = vadd.xlane.f32.xlu1 %v293_v10 }
  0xf5   :  { %328 = vadd.xlane.f32.xlu0 %v290_v15  ;;  %366 = vadd.xlane.f32.xlu1 %v309_v16 }
  0xf9   :  { %360 = vadd.xlane.f32.xlu0 %v306_v20  ;;  %330 = vadd.xlane.f32.xlu1 %v291_v21 }
  0xfd   :  { %336 = vadd.xlane.f32.xlu0 %v294_v25  ;;  %362 = vadd.xlane.f32.xlu1 %v307_v26 }
 0x101   :  { %368 = vadd.xlane.f32.xlu0 %v310_v30  ;;  %338 = vadd.xlane.f32.xlu1 %v295_v32 }
 0x105   :  { %340 = vadd.xlane.f32.xlu0 %v296_v35  ;;  %370 = vadd.xlane.f32.xlu1 %v311_v36 }
 0x109   :  { %372 = vadd.xlane.f32.xlu0 %v312_v40  ;;  %342 = vadd.xlane.f32.xlu1 %v297_v41  ;;  %v4259_v40 = vsub.s32 %v757_v29, %v4148_v1 }
 0x10d   :  { %344 = vadd.xlane.f32.xlu0 %v298_v44  ;;  %374 = vadd.xlane.f32.xlu1 %v313_v45 }
 0x111   :  { %376 = vadd.xlane.f32.xlu0 %v314_v47  ;;  %346 = vadd.xlane.f32.xlu1 %v299_v48 }
 0x115   :  { %378 = vadd.xlane.f32.xlu1 %v315_v49  ;;  %388 = vadd.xlane.f32.xlu0 %v386_v63 }
 0x119   :  { %390 = vadd.xlane.f32.xlu1 %v387_v2 }
 0x162   :  { %v317_v4 = vpop.xlane.xlu1 %316 }
 0x166   :  { %v349_v5 = vpop.xlane.xlu0 %348  ;;  %v319_v8 = vpop.xlane.xlu1 %318 }
 0x167   :  { %v680_v30 = vpack.c.bf16 %v319_v8, %v317_v4 }
 0x169   :  { %v724_v41 = vunpack.c.l.b16 %v680_v30  ;;  %v725_v51 = vunpack.c.h.b16 %v680_v30 }
 0x16a   :  { %v321_v9 = vpop.xlane.xlu0 %320  ;;  %v351_v10 = vpop.xlane.xlu1 %350 }
 0x16b   :  { %v688_v39 = vpack.c.bf16 %v351_v10, %v349_v5  ;;  %v761_v54 = vrot.slane %v724_v41, %v4259_v40  ;;  %v766_v3 = vrot.slane %v725_v51, %v4262_v50 }
 0x16d   :  { %v740_v52 = vunpack.c.l.b16 %v688_v39  ;;  %v741_v53 = vunpack.c.h.b16 %v688_v39 }
 0x16e   :  { %v353_v12 = vpop.xlane.xlu0 %352  ;;  %v323_v13 = vpop.xlane.xlu1 %322 }
 0x16f   :  { %v681_v32 = vpack.c.bf16 %v323_v13, %v321_v9  ;;  %v835_v4 = vrot.slane %v740_v52, %v4259_v40  ;;  %v839_v5 = vrot.slane %v741_v53, %v4262_v50 }
 0x171   :  { %v726_v42 = vunpack.c.l.b16 %v681_v32  ;;  %v727_v43 = vunpack.c.h.b16 %v681_v32 }
 0x172   :  { %v325_v14 = vpop.xlane.xlu0 %324  ;;  %v355_v15 = vpop.xlane.xlu1 %354 }
 0x173   :  { %v689_v33 = vpack.c.bf16 %v355_v15, %v353_v12  ;;  %v772_v55 = vrot.slane %v726_v42, %v4259_v40  ;;  %v776_v56 = vrot.slane %v727_v43, %v4262_v50 }
 0x175   :  { %v742_v44 = vunpack.c.l.b16 %v689_v33  ;;  %v743_v45 = vunpack.c.h.b16 %v689_v33  ;;  %v777_v10 = vsel %vm767_vm6, %v776_v56, %v772_v55 }
 0x176   :  { %v357_v16 = vpop.xlane.xlu0 %356  ;;  %v327_v17 = vpop.xlane.xlu1 %326 }
 0x177   :  { %v682_v34 = vpack.c.bf16 %v327_v17, %v325_v14  ;;  %v844_v31 = vrot.slane %v742_v44, %v4259_v40  ;;  %v848_v58 = vrot.slane %v743_v45, %v4262_v50 }
 0x179   :  { %v728_v46 = vunpack.c.l.b16 %v682_v34  ;;  %v729_v47 = vunpack.c.h.b16 %v682_v34  ;;  %v849_v12 = vsel %vm767_vm6, %v848_v58, %v844_v31 }
 0x17a   :  { %v333_v18 = vpop.xlane.xlu0 %332  ;;  %v359_v20 = vpop.xlane.xlu1 %358 }
 0x17b   :  { %v690_v48 = vpack.c.bf16 %v359_v20, %v357_v16  ;;  %v781_v59 = vrot.slane %v728_v46, %v4259_v40  ;;  %v785_v60 = vrot.slane %v729_v47, %v4262_v50 }
 0x17d   :  { %v744_v61 = vunpack.c.l.b16 %v690_v48  ;;  %v745_v62 = vunpack.c.h.b16 %v690_v48  ;;  %v786_v14 = vsel %vm767_vm6, %v785_v60, %v781_v59 }
 0x17e   :  { %v365_v21 = vpop.xlane.xlu0 %364  ;;  %v335_v22 = vpop.xlane.xlu1 %334 }
 0x17f   :  { %v684_v13 = vpack.c.bf16 %v335_v22, %v333_v18  ;;  %v853_v15 = vrot.slane %v744_v61, %v4259_v40  ;;  %v857_v16 = vrot.slane %v745_v62, %v4262_v50 }
 0x181   :  { %v732_v37 = vunpack.c.l.b16 %v684_v13  ;;  %v733_v39 = vunpack.c.h.b16 %v684_v13 }
 0x182   :  { %v329_v23 = vpop.xlane.xlu0 %328  ;;  %v367_v25 = vpop.xlane.xlu1 %366 }
 0x183   :  { %v692_v17 = vpack.c.bf16 %v367_v25, %v365_v21  ;;  %v858_v25 = vsel %vm767_vm6, %v857_v16, %v853_v15  ;;  %v799_v53 = vrot.slane %v732_v37, %v4259_v40  ;;  %v803_v61 = vrot.slane %v733_v39, %v4262_v50 }
 0x185   :  { %v748_v41 = vunpack.c.l.b16 %v692_v17  ;;  %v749_v44 = vunpack.c.h.b16 %v692_v17 }
 0x186   :  { %v361_v26 = vpop.xlane.xlu0 %360  ;;  %v331_v28 = vpop.xlane.xlu1 %330 }
 0x187   :  { %v683_v8 = vpack.c.bf16 %v331_v28, %v329_v23  ;;  %v768_v23 = vsel %vm767_vm6, %v766_v3, %v761_v54  ;;  %v840_v28 = vsel %vm767_vm6, %v839_v5, %v835_v4  ;;  %v871_v62 = vrot.slane %v748_v41, %v4259_v40 }
 0x188   :  { %v905_v32 = vsel %vm904_vm7, %v777_v10, %v768_v23  ;;  %v918_v34 = vsel %vm904_vm7, %v849_v12, %v840_v28 }
 0x189   :  { %v731_v30 = vunpack.c.h.b16 %v683_v8  ;;  %v919_v52 = vsel %vm906_vm8, %v858_v25, %v918_v34 }
 0x18a   :  { %v337_v35 = vpop.xlane.xlu0 %336  ;;  %v363_v36 = vpop.xlane.xlu1 %362 }
 0x18b   :  { %v691_v9 = vpack.c.bf16 %v363_v36, %v361_v26  ;;  %v730_v26 = vunpack.c.l.b16 %v683_v8  ;;  %v907_v36 = vsel %vm906_vm8, %v786_v14, %v905_v32  ;;  %v794_v46 = vrot.slane %v731_v30, %v4262_v50 }
 0x18c   :  { %v804_v32 = vsel %vm767_vm6, %v803_v61, %v799_v53  ;;  %v3626_v61 = vld [vmem:[#allocation5 + $0x48] ss:$16 sps:$4 sm:$0xff]  }
 0x18d   :  { %v746_v33 = vunpack.c.l.b16 %v691_v9  ;;  %v747_v18 = vunpack.c.h.b16 %v691_v9  ;;  %v790_v45 = vrot.slane %v730_v26, %v4259_v40 }
 0x18e   :  { %v369_v0 = vpop.xlane.xlu0 %368  ;;  %v339_v49 = vpop.xlane.xlu1 %338 }
 0x18f   :  { %v685_v22 = vpack.c.bf16 %v339_v49, %v337_v35  ;;  %v862_v35 = vrot.slane %v746_v33, %v4259_v40  ;;  %v866_v48 = vrot.slane %v747_v18, %v4262_v50  ;;  %v795_v3 = vsel %vm767_vm6, %v794_v46, %v790_v45 }
 0x190   :  { %v909_v23 = vsel %vm908_vm9, %v795_v3, %v907_v36  ;;  %v3632_v3 = vld [vmem:[#allocation5 + $0x68] ss:$16 sps:$4 sm:$0xff]  }
 0x191   :  { %v734_v49 = vunpack.c.l.b16 %v685_v22  ;;  %v735_v51 = vunpack.c.h.b16 %v685_v22  ;;  %v867_v4 = vsel %vm767_vm6, %v866_v48, %v862_v35  ;;  %v911_v36 = vsel %vm910_vm10, %v804_v32, %v909_v23  ;;  %v3658_v23 = vld [vmem:[#allocation5 + $0xec] ss:$16 sps:$4 sm:$0xff]  }
 0x192   :  { %v341_v63 = vpop.xlane.xlu0 %340  ;;  %v371_v2 = vpop.xlane.xlu1 %370  ;;  %v920_v33 = vsel %vm908_vm9, %v867_v4, %v919_v52  ;;  %v3614_v52 = vld [vmem:[#allocation5 + $0x8] ss:$16 sps:$4 sm:$0xff]   ;;  %v3637_v4 = vld [vmem:[#allocation5 + $0x84] ss:$16 sps:$4 sm:$0xff]   ;;  %v3664_v32 = vld [vmem:[#allocation5 + $0x10c] ss:$16 sps:$4 sm:$0xff]  }
 0x193   :  { %v693_v21 = vpack.c.bf16 %v371_v2, %v369_v0  ;;  %v808_v5 = vrot.slane %v734_v49, %v4259_v40  ;;  %v812_v8 = vrot.slane %v735_v51, %v4262_v50 }
 0x195   :  { %v750_v54 = vunpack.c.l.b16 %v693_v21  ;;  %v751_v55 = vunpack.c.h.b16 %v693_v21  ;;  %v813_v18 = vsel %vm767_vm6, %v812_v8, %v808_v5  ;;  %v3640_v5 = vld [vmem:[#allocation5 + $0x8c] ss:$16 sps:$4 sm:$0xff]   ;;  %v3635_v8 = vld [vmem:[#allocation5 + $0x80] ss:$16 sps:$4 sm:$0xff]  }
 0x196   :  { %v373_v20 = vpop.xlane.xlu0 %372  ;;  %v343_v29 = vpop.xlane.xlu1 %342  ;;  %v913_v45 = vsel %vm912_vm11, %v813_v18, %v911_v36  ;;  %v3662_v18 = vld [vmem:[#allocation5 + $0x108] ss:$16 sps:$4 sm:$0xff]   ;;  %v3673_v36 = vld [vmem:[#allocation5 + $0x144] ss:$16 sps:$4 sm:$0xff]  }
 0x197   :  { %v686_v42 = vpack.c.bf16 %v343_v29, %v341_v63  ;;  %v875_v63 = vrot.slane %v749_v44, %v4262_v50  ;;  %v880_v9 = vrot.slane %v750_v54, %v4259_v40  ;;  %v884_v10 = vrot.slane %v751_v55, %v4262_v50  ;;  %v3619_v54 = vld [vmem:[#allocation5 + $0x24] ss:$16 sps:$4 sm:$0xff]   ;;  %v3622_v55 = vld [vmem:[#allocation5 + $0x2c] ss:$16 sps:$4 sm:$0xff]  }
 0x199   :  { %v736_v56 = vunpack.c.l.b16 %v686_v42  ;;  %v737_v31 = vunpack.c.h.b16 %v686_v42  ;;  %v885_v22 = vsel %vm767_vm6, %v884_v10, %v880_v9  ;;  %v876_v21 = vsel %vm767_vm6, %v875_v63, %v871_v62  ;;  %v3631_v62 = vld [vmem:[#allocation5 + $0x64] ss:$16 sps:$4 sm:$0xff]   ;;  %v3634_v63 = vld [vmem:[#allocation5 + $0x6c] ss:$16 sps:$4 sm:$0xff]   ;;  %v3638_v9 = vld [vmem:[#allocation5 + $0x88] ss:$16 sps:$4 sm:$0xff]  }
 0x19a   :  { %v375_v43 = vpop.xlane.xlu1 %374  ;;  %v345_v0 = vpop.xlane.xlu0 %344  ;;  %v921_v41 = vsel %vm910_vm10, %v876_v21, %v920_v33  ;;  %v3643_v10 = vld [vmem:[#allocation5 + $0xa4] ss:$16 sps:$4 sm:$0xff]   ;;  %v3659_v33 = vld [vmem:[#allocation5 + $0x100] ss:$16 sps:$4 sm:$0xff]   ;;  %v3668_v21 = vld [vmem:[#allocation5 + $0x128] ss:$16 sps:$4 sm:$0xff]  }
 0x19b   :  { %v694_v47 = vpack.c.bf16 %v375_v43, %v373_v20  ;;  %v817_v14 = vrot.slane %v736_v56, %v4259_v40  ;;  %v821_v15 = vrot.slane %v737_v31, %v4262_v50  ;;  %v922_v46 = vsel %vm912_vm11, %v885_v22, %v921_v41  ;;  %v3617_v56 = vld [vmem:[#allocation5 + $0x20] ss:$16 sps:$4 sm:$0xff]   ;;  %v3620_v31 = vld [vmem:[#allocation5 + $0x28] ss:$16 sps:$4 sm:$0xff]   ;;  %v3667_v22 = vld [vmem:[#allocation5 + $0x124] ss:$16 sps:$4 sm:$0xff]  }
 0x19c   :  { %v3674_v41 = vld [vmem:[#allocation5 + $0x148] ss:$16 sps:$4 sm:$0xff]  }
 0x19d   :  { %v752_v58 = vunpack.c.l.b16 %v694_v47  ;;  %v753_v59 = vunpack.c.h.b16 %v694_v47  ;;  %v822_v25 = vsel %vm767_vm6, %v821_v15, %v817_v14  ;;  %v3644_v14 = vld [vmem:[#allocation5 + $0xa8] ss:$16 sps:$4 sm:$0xff]   ;;  %v3649_v15 = vld [vmem:[#allocation5 + $0xc4] ss:$16 sps:$4 sm:$0xff]  }
 0x19e   :  { %v347_v60 = vpop.xlane.xlu1 %346  ;;  %v377_v20 = vpop.xlane.xlu0 %376  ;;  %v915_v35 = vsel %vm914_vm12, %v822_v25, %v913_v45  ;;  %v3676_v25 = vld [vmem:[#allocation5 + $0x14c] ss:$16 sps:$4 sm:$0xff]   ;;  %v3680_v45 = vld [vmem:[#allocation5 + $0x168] ss:$16 sps:$4 sm:$0xff]  }
 0x19f   :  { %v687_v2 = vpack.c.bf16 %v347_v60, %v345_v0  ;;  %v889_v16 = vrot.slane %v752_v58, %v4259_v40  ;;  %v893_v17 = vrot.slane %v753_v59, %v4262_v50  ;;  %v3611_v0 = vld [vmem:[#allocation5] ss:$16 sps:$4 sm:$0xff]   ;;  %v3625_v58 = vld [vmem:[#allocation5 + $0x44] ss:$16 sps:$4 sm:$0xff]   ;;  %v3628_v59 = vld [vmem:[#allocation5 + $0x4c] ss:$16 sps:$4 sm:$0xff]  }
 0x1a0   :  { %v3623_v60 = vld [vmem:[#allocation5 + $0x40] ss:$16 sps:$4 sm:$0xff]  }
 0x1a1   :  { %v738_v12 = vunpack.c.l.b16 %v687_v2  ;;  %v739_v13 = vunpack.c.h.b16 %v687_v2  ;;  %v894_v39 = vsel %vm767_vm6, %v893_v17, %v889_v16  ;;  %v3629_v2 = vld [vmem:[#allocation5 + $0x60] ss:$16 sps:$4 sm:$0xff]   ;;  %v3652_v16 = vld [vmem:[#allocation5 + $0xcc] ss:$16 sps:$4 sm:$0xff]  }
 0x1a2   :  { %v379_v29 = vpop.xlane.xlu1 %378  ;;  %v923_v48 = vsel %vm914_vm12, %v894_v39, %v922_v46  ;;  %v3647_v17 = vld [vmem:[#allocation5 + $0xc0] ss:$16 sps:$4 sm:$0xff]   ;;  %v3685_v46 = vld [vmem:[#allocation5 + $0x184] ss:$16 sps:$4 sm:$0xff]  }
 0x1a3   :  { %v826_v28 = vrot.slane %v738_v12, %v4259_v40  ;;  %v830_v26 = vrot.slane %v739_v13, %v4262_v50  ;;  %v695_v30 = vpack.c.bf16 %v379_v29, %v377_v20  ;;  %v3646_v12 = vld [vmem:[#allocation5 + $0xac] ss:$16 sps:$4 sm:$0xff]   ;;  %v3641_v13 = vld [vmem:[#allocation5 + $0xa0] ss:$16 sps:$4 sm:$0xff]   ;;  %v3650_v20 = vld [vmem:[#allocation5 + $0xc8] ss:$16 sps:$4 sm:$0xff]  }
 0x1a4   :  { %v3655_v29 = vld [vmem:[#allocation5 + $0xe4] ss:$16 sps:$4 sm:$0xff]   ;;  %v3671_v39 = vld [vmem:[#allocation5 + $0x140] ss:$16 sps:$4 sm:$0xff]  }
 0x1a5   :  { %v754_v34 = vunpack.c.l.b16 %v695_v30  ;;  %v755_v37 = vunpack.c.h.b16 %v695_v30  ;;  %v831_v42 = vsel %vm767_vm6, %v830_v26, %v826_v28  ;;  %v3653_v28 = vld [vmem:[#allocation5 + $0xe0] ss:$16 sps:$4 sm:$0xff]   ;;  %v3656_v26 = vld [vmem:[#allocation5 + $0xe8] ss:$16 sps:$4 sm:$0xff]   ;;  %v3661_v30 = vld [vmem:[#allocation5 + $0x104] ss:$16 sps:$4 sm:$0xff]  }
 0x1a6   :  { %v917_v49 = vsel %vm916_vm13, %v831_v42, %v915_v35  ;;  %v3679_v42 = vld [vmem:[#allocation5 + $0x164] ss:$16 sps:$4 sm:$0xff]   ;;  %v3683_v35 = vld [vmem:[#allocation5 + $0x180] ss:$16 sps:$4 sm:$0xff]  }
 0x1a7   :  { %v898_v43 = vrot.slane %v754_v34, %v4259_v40  ;;  %v902_v44 = vrot.slane %v755_v37, %v4262_v50  ;;  %v3670_v34 = vld [vmem:[#allocation5 + $0x12c] ss:$16 sps:$4 sm:$0xff]   ;;  %v3665_v37 = vld [vmem:[#allocation5 + $0x120] ss:$16 sps:$4 sm:$0xff]  }
 0x1a9   :  { %v903_v47 = vsel %vm767_vm6, %v902_v44, %v898_v43  ;;  %v3682_v43 = vld [vmem:[#allocation5 + $0x16c] ss:$16 sps:$4 sm:$0xff]   ;;  %v3677_v44 = vld [vmem:[#allocation5 + $0x160] ss:$16 sps:$4 sm:$0xff]  }
 0x1aa   :  { %v924_v51 = vsel %vm916_vm13, %v903_v47, %v923_v48  ;;  %v3688_v47 = vld [vmem:[#allocation5 + $0x18c] ss:$16 sps:$4 sm:$0xff]   ;;  %v3686_v48 = vld [vmem:[#allocation5 + $0x188] ss:$16 sps:$4 sm:$0xff]  }
 0x1ab   :  { %v925_v53 = vpack.c.b16 %v924_v51, %v917_v49  ;;  %v3691_v49 = vld [vmem:[#allocation5 + $0x1a4] ss:$16 sps:$4 sm:$0xff]   ;;  %v3694_v51 = vld [vmem:[#allocation5 + $0x1ac] ss:$16 sps:$4 sm:$0xff]  }
 0x1ad   :  { %3308 = vmatmul.mubr.msk.bf16.vlgmr.msra.gmra.mrb[0].mxu0 %vm926_vm14, %v925_v53  ;;  %3309 = vmatmul.mubr.msk.bf16.vlgmr.msra.gmra.mrb[0].mxu1 %vm926_vm14, %v925_v53  ;;  %v3697_v53 = vld [vmem:[#allocation5 + $0x1c4] ss:$16 sps:$4 sm:$0xff]  }
 0x1ae   :  { %1811 = vmatpush1.bf16.msra.mxu0 %v3611_v0  ;;  %1897 = vmatpush1.bf16.msra.mxu1 %v3614_v52  ;;  %v3689_v0 = vld [vmem:[#allocation5 + $0x1a0] ss:$16 sps:$4 sm:$0xff]   ;;  %v3692_v52 = vld [vmem:[#allocation5 + $0x1a8] ss:$16 sps:$4 sm:$0xff]  }
 0x1af   :  { %1812 = vmatprep.subr.bf16.mxu0 %v3619_v54  ;;  %1898 = vmatprep.subr.bf16.mxu1 %v3622_v55  ;;  %v3700_v54 = vld [vmem:[#allocation5 + $0x1cc] ss:$16 sps:$4 sm:$0xff]   ;;  %v3695_v55 = vld [vmem:[#allocation5 + $0x1c0] ss:$16 sps:$4 sm:$0xff]  }
 0x1b2   :  { %1813 = vmatpush1.bf16.msra.mxu0 %v3617_v56  ;;  %1899 = vmatpush1.bf16.msra.mxu1 %v3620_v31  ;;  %v3698_v56 = vld [vmem:[#allocation5 + $0x1c8] ss:$16 sps:$4 sm:$0xff]   ;;  %v389_v31 = vpop.xlane.xlu0 %388 }
 0x1b3   :  { %1814 = vmatprep.subr.bf16.mxu0 %v3625_v58  ;;  %1900 = vmatprep.subr.bf16.mxu1 %v3628_v59  ;;  %3999 = vrsqrt.f32 %v389_v31  ;;  %v391_v58 = vpop.xlane.xlu1 %390  ;;  %vm392_vm15 = vcmp.gt.f32.partialorder %v389_v31, 0.0 }
 0x1b4   :  { %4001 = vrsqrt.f32 %v391_v58  ;;  %vm393_vm0 = vcmp.gt.f32.partialorder %v391_v58, 0.0 }
 0x1b6   :  { %1815 = vmatpush1.bf16.msra.mxu0 %v3623_v60  ;;  %1901 = vmatpush1.bf16.msra.mxu1 %v3626_v61 }
 0x1b7   :  { %1816 = vmatprep.subr.bf16.mxu0 %v3631_v62  ;;  %1902 = vmatprep.subr.bf16.mxu1 %v3634_v63  ;;  %v3701_v63 = vld [vmem:[#allocation5 + $0x1e0] ss:$16 sps:$4 sm:$0xff]  }
 0x1ba   :  { %1817 = vmatpush1.bf16.msra.mxu0 %v3629_v2  ;;  %1903 = vmatpush1.bf16.msra.mxu1 %v3632_v3  ;;  %v3703_v2 = vld [vmem:[#allocation5 + $0x1e4] ss:$16 sps:$4 sm:$0xff]   ;;  %v3704_v3 = vld [vmem:[#allocation5 + $0x1e8] ss:$16 sps:$4 sm:$0xff]  }
 0x1bb   :  { %1818 = vmatprep.subr.bf16.mxu0 %v3637_v4  ;;  %1904 = vmatprep.subr.bf16.mxu1 %v3640_v5  ;;  %v3706_v5 = vld [vmem:[#allocation5 + $0x1ec] ss:$16 sps:$4 sm:$0xff]  }
 0x1bd   :  { %v4000_v59 = vpop.eup %3999 }
 0x1be   :  { %1819 = vmatpush1.bf16.msra.mxu0 %v3635_v8  ;;  %1905 = vmatpush1.bf16.msra.mxu1 %v3638_v9  ;;  %v396_v60 = vsel %vm392_vm15, %v4000_v59, 0.0  ;;  %v4002_v62 = vpop.eup %4001  ;;  %v3709_v9 = vld [vmem:[#allocation5 + $0x204] ss:$16 sps:$4 sm:$0xff]  }
 0x1bf   :  { %1820 = vmatprep.subr.bf16.mxu0 %v3643_v10  ;;  %1906 = vmatprep.subr.bf16.mxu1 %v3646_v12  ;;  %v398_v61 = vmul.f32 %v4158_v6, %v396_v60  ;;  %v397_v8 = vsel %vm393_vm0, %v4002_v62, 0.0  ;;  %v3712_v10 = vld [vmem:[#allocation5 + $0x20c] ss:$16 sps:$4 sm:$0xff]  }
 0x1c0   :  { %v399_v12 = vmul.f32 %v4160_v7, %v397_v8 }
 0x1c1   :  { %v4330_v4 = vmul.f32 %v4251_v38, %v398_v61 }
 0x1c2   :  { %1821 = vmatpush1.bf16.msra.mxu0 %v3641_v13  ;;  %1907 = vmatpush1.bf16.msra.mxu1 %v3644_v14  ;;  %v4336_v13 = vmul.f32 %v4179_v27, %v396_v60  ;;  %v4339_v14 = vmul.f32 %v4167_v11, %v397_v8 }
 0x1c3   :  { %1822 = vmatprep.subr.bf16.mxu0 %v3649_v15  ;;  %1908 = vmatprep.subr.bf16.mxu1 %v3652_v16  ;;  %v413_v6 = vrot.slane %v4330_v4, %v4170_v19  ;;  %v401_v16 = vmul.f32 %v4251_v38, %v399_v12 }
 0x1c5   :  { %v429_v15 = vrot.slane %v413_v6, %v4170_v19  ;;  %v462_v11 = vrot.slane %v401_v16, %v4170_v19 }
 0x1c6   :  { %1823 = vmatpush1.bf16.msra.mxu0 %v3647_v17  ;;  %1909 = vmatpush1.bf16.msra.mxu1 %v3650_v20  ;;  %v421_v20 = vcombine.high %v413_v6, %v413_v6 }
 0x1c7   :  { %1824 = vmatprep.subr.bf16.mxu0 %v3655_v29  ;;  %1910 = vmatprep.subr.bf16.mxu1 %v3658_v23  ;;  %v507_v17 = vrot.slane %v429_v15, %v4175_v24  ;;  %v478_v38 = vrot.slane %v462_v11, %v4170_v19 }
 0x1c8   :  { %v443_v23 = vrot.slane %v421_v20, %v4170_v19 }
 0x1c9   :  { %v584_v7 = vmul.f32 %v507_v17, %v4336_v13  ;;  %v585_v29 = vmul.f32 %v507_v17, %v4339_v14 }
 0x1ca   :  { %1825 = vmatpush1.bf16.msra.mxu0 %v3653_v28  ;;  %1911 = vmatpush1.bf16.msra.mxu1 %v3656_v26  ;;  %v511_v27 = vrot.slane %v443_v23, %v4175_v24 }
 0x1cb   :  { %1826 = vmatprep.subr.bf16.mxu0 %v3661_v30  ;;  %1912 = vmatprep.subr.bf16.mxu1 %v3664_v32  ;;  %v539_v30 = vrot.slane %v478_v38, %v4175_v24  ;;  %v470_v32 = vcombine.high %v462_v11, %v462_v11 }
 0x1cc   :  { %616 = vadd.xlane.f32.xlu0 %v584_v7  ;;  %618 = vadd.xlane.f32.xlu1 %v585_v29  ;;  %v586_v28 = vmul.f32 %v511_v27, %v4336_v13  ;;  %v587_v26 = vmul.f32 %v511_v27, %v4339_v14 }
 0x1ce   :  { %1827 = vmatpush1.bf16.msra.mxu0 %v3659_v33  ;;  %1913 = vmatpush1.bf16.msra.mxu1 %v3662_v18  ;;  %v601_v33 = vmul.f32 %v539_v30, %v4339_v14  ;;  %v600_v18 = vmul.f32 %v539_v30, %v4336_v13 }
 0x1cf   :  { %1828 = vmatprep.subr.bf16.mxu0 %v3667_v22  ;;  %1914 = vmatprep.subr.bf16.mxu1 %v3670_v34  ;;  %v492_v22 = vrot.slane %v470_v32, %v4170_v19 }
 0x1d0   :  { %620 = vadd.xlane.f32.xlu0 %v586_v28  ;;  %622 = vadd.xlane.f32.xlu1 %v587_v26 }
 0x1d1   :  { %v543_v34 = vrot.slane %v492_v22, %v4175_v24 }
 0x1d2   :  { %1829 = vmatpush1.bf16.msra.mxu0 %v3665_v37  ;;  %1915 = vmatpush1.bf16.msra.mxu1 %v3668_v21  ;;  %v451_v37 = vcombine.high %v429_v15, %v429_v15 }
 0x1d3   :  { %1830 = vmatprep.subr.bf16.mxu0 %v3673_v36  ;;  %1916 = vmatprep.subr.bf16.mxu1 %v3676_v25  ;;  %v603_v21 = vmul.f32 %v543_v34, %v4339_v14  ;;  %v602_v36 = vmul.f32 %v543_v34, %v4336_v13 }
 0x1d4   :  { %650 = vadd.xlane.f32.xlu1 %v601_v33  ;;  %648 = vadd.xlane.f32.xlu0 %v600_v18  ;;  %v515_v25 = vrot.slane %v451_v37, %v4175_v24 }
 0x1d6   :  { %1831 = vmatpush1.bf16.msra.mxu0 %v3671_v39  ;;  %1917 = vmatpush1.bf16.msra.mxu1 %v3674_v41  ;;  %v589_v39 = vmul.f32 %v515_v25, %v4339_v14  ;;  %v588_v41 = vmul.f32 %v515_v25, %v4336_v13 }
 0x1d7   :  { %1832 = vmatprep.subr.bf16.mxu0 %v3679_v42  ;;  %1918 = vmatprep.subr.bf16.mxu1 %v3682_v43  ;;  %v500_v42 = vcombine.high %v478_v38, %v478_v38 }
 0x1d8   :  { %654 = vadd.xlane.f32.xlu1 %v603_v21  ;;  %652 = vadd.xlane.f32.xlu0 %v602_v36 }
 0x1d9   :  { %v547_v43 = vrot.slane %v500_v42, %v4175_v24 }
 0x1da   :  { %1833 = vmatpush1.bf16.msra.mxu0 %v3677_v44  ;;  %1919 = vmatpush1.bf16.msra.mxu1 %v3680_v45 }
 0x1db   :  { %1834 = vmatprep.subr.bf16.mxu0 %v3685_v46  ;;  %1920 = vmatprep.subr.bf16.mxu1 %v3688_v47  ;;  %v605_v44 = vmul.f32 %v547_v43, %v4339_v14  ;;  %v604_v45 = vmul.f32 %v547_v43, %v4336_v13  ;;  %v453_v46 = vcombine.high %v443_v23, %v443_v23 }
 0x1dc   :  { %626 = vadd.xlane.f32.xlu1 %v589_v39  ;;  %624 = vadd.xlane.f32.xlu0 %v588_v41 }
 0x1dd   :  { %v519_v47 = vrot.slane %v453_v46, %v4175_v24 }
 0x1de   :  { %1835 = vmatpush1.bf16.msra.mxu0 %v3683_v35  ;;  %1921 = vmatpush1.bf16.msra.mxu1 %v3686_v48  ;;  %v406_v35 = vcombine.high %v4330_v4, %v4330_v4 }
 0x1df   :  { %1836 = vmatprep.subr.bf16.mxu0 %v3691_v49  ;;  %1922 = vmatprep.subr.bf16.mxu1 %v3694_v51  ;;  %v591_v48 = vmul.f32 %v519_v47, %v4339_v14  ;;  %v590_v49 = vmul.f32 %v519_v47, %v4336_v13  ;;  %v502_v51 = vcombine.high %v492_v22, %v492_v22  ;;  %v3707_v47 = vld [vmem:[#allocation5 + $0x200] ss:$16 sps:$4 sm:$0xff]  }
 0x1e0   :  { %658 = vadd.xlane.f32.xlu1 %v605_v44  ;;  %656 = vadd.xlane.f32.xlu0 %v604_v45 }
 0x1e2   :  { %1837 = vmatpush1.bf16.msra.mxu0 %v3689_v0  ;;  %1923 = vmatpush1.bf16.msra.mxu1 %v3692_v52  ;;  %v551_v0 = vrot.slane %v502_v51, %v4175_v24  ;;  %v455_v52 = vcombine.high %v401_v16, %v401_v16  ;;  %v3721_v51 = vld [vmem:[#allocation5 + $0x244] ss:$16 sps:$4 sm:$0xff]  }
 0x1e3   :  { %1838 = vmatprep.subr.bf16.mxu0 %v3697_v53  ;;  %1924 = vmatprep.subr.bf16.mxu1 %v3700_v54  ;;  %v420_v53 = vrot.slane %v406_v35, %v4170_v19  ;;  %v3710_v35 = vld [vmem:[#allocation5 + $0x208] ss:$16 sps:$4 sm:$0xff]  }
 0x1e4   :  { %630 = vadd.xlane.f32.xlu1 %v591_v48  ;;  %628 = vadd.xlane.f32.xlu0 %v590_v49  ;;  %v607_v54 = vmul.f32 %v551_v0, %v4339_v14  ;;  %v469_v58 = vrot.slane %v455_v52, %v4170_v19  ;;  %v3713_v48 = vld [vmem:[#allocation5 + $0x220] ss:$16 sps:$4 sm:$0xff]   ;;  %v3716_v49 = vld [vmem:[#allocation5 + $0x228] ss:$16 sps:$4 sm:$0xff]  }
 0x1e5   :  { %v3719_v52 = vld [vmem:[#allocation5 + $0x240] ss:$16 sps:$4 sm:$0xff]  }
 0x1e6   :  { %1839 = vmatpush1.bf16.msra.mxu0 %v3695_v55  ;;  %1925 = vmatpush1.bf16.msra.mxu1 %v3698_v56  ;;  %v606_v55 = vmul.f32 %v551_v0, %v4336_v13  ;;  %v436_v56 = vrot.slane %v420_v53, %v4170_v19  ;;  %v485_v61 = vrot.slane %v469_v58, %v4170_v19  ;;  %v3724_v0 = vld [vmem:[#allocation5 + $0x24c] ss:$16 sps:$4 sm:$0xff]  }
 0x1e7   :  { %1840 = vmatprep.subr.bf16.mxu0 %v3703_v2  ;;  %1926 = vmatprep.subr.bf16.mxu1 %v3706_v5  ;;  %v471_v8 = vcombine.high %v469_v58, %v469_v58  ;;  %v3733_v58 = vld [vmem:[#allocation5 + $0x284] ss:$16 sps:$4 sm:$0xff]  }
 0x1e8   :  { %662 = vadd.xlane.f32.xlu1 %v607_v54  ;;  %660 = vadd.xlane.f32.xlu0 %v606_v55  ;;  %v523_v31 = vrot.slane %v436_v56, %v4175_v24  ;;  %v555_v62 = vrot.slane %v485_v61, %v4175_v24  ;;  %v452_v15 = vcombine.high %v436_v56, %v436_v56  ;;  %v3727_v54 = vld [vmem:[#allocation5 + $0x264] ss:$16 sps:$4 sm:$0xff]   ;;  %v3730_v55 = vld [vmem:[#allocation5 + $0x26c] ss:$16 sps:$4 sm:$0xff]   ;;  %v3725_v56 = vld [vmem:[#allocation5 + $0x260] ss:$16 sps:$4 sm:$0xff]  }
 0x1e9   :  { %v499_v12 = vrot.slane %v471_v8, %v4170_v19  ;;  %v501_v23 = vcombine.high %v485_v61, %v485_v61  ;;  %v3734_v61 = vld [vmem:[#allocation5 + $0x288] ss:$16 sps:$4 sm:$0xff]   ;;  %v3743_v8 = vld [vmem:[#allocation5 + $0x2c0] ss:$16 sps:$4 sm:$0xff]  }
 0x1ea   :  { %1841 = vmatpush1.bf16.msra.mxu0 %v3701_v63  ;;  %1927 = vmatpush1.bf16.msra.mxu1 %v3704_v3  ;;  %v593_v59 = vmul.f32 %v523_v31, %v4339_v14  ;;  %v592_v60 = vmul.f32 %v523_v31, %v4336_v13  ;;  %v422_v63 = vcombine.high %v420_v53, %v420_v53  ;;  %v3722_v53 = vld [vmem:[#allocation5 + $0x248] ss:$16 sps:$4 sm:$0xff]  }
 0x1eb   :  { %1853 = vmatprep.subr.bf16.mxu0 %v3709_v9  ;;  %1939 = vmatprep.subr.bf16.mxu1 %v3712_v10  ;;  %v609_v2 = vmul.f32 %v555_v62, %v4339_v14  ;;  %v608_v3 = vmul.f32 %v555_v62, %v4336_v13  ;;  %v559_v6 = vrot.slane %v499_v12, %v4175_v24  ;;  %v3728_v31 = vld [vmem:[#allocation5 + $0x268] ss:$16 sps:$4 sm:$0xff]   ;;  %v3739_v62 = vld [vmem:[#allocation5 + $0x2a4] ss:$16 sps:$4 sm:$0xff]  }
 0x1ec   :  { %634 = vadd.xlane.f32.xlu1 %v593_v59  ;;  %632 = vadd.xlane.f32.xlu0 %v592_v60  ;;  %v450_v4 = vrot.slane %v422_v63, %v4170_v19  ;;  %v531_v20 = vrot.slane %v452_v15, %v4175_v24  ;;  %v563_v19 = vrot.slane %v501_v23, %v4175_v24  ;;  %v3736_v59 = vld [vmem:[#allocation5 + $0x28c] ss:$16 sps:$4 sm:$0xff]   ;;  %v3731_v60 = vld [vmem:[#allocation5 + $0x280] ss:$16 sps:$4 sm:$0xff]   ;;  %v3752_v15 = vld [vmem:[#allocation5 + $0x2e8] ss:$16 sps:$4 sm:$0xff]  }
 0x1ed   :  { %v611_v16 = vmul.f32 %v559_v6, %v4339_v14  ;;  %v610_v17 = vmul.f32 %v559_v6, %v4336_v13  ;;  %v503_v32 = vcombine.high %v499_v12, %v499_v12  ;;  %v3742_v63 = vld [vmem:[#allocation5 + $0x2ac] ss:$16 sps:$4 sm:$0xff]   ;;  %v3749_v6 = vld [vmem:[#allocation5 + $0x2e0] ss:$16 sps:$4 sm:$0xff]  }
 0x1ee   :  { %v527_v5 = vrot.slane %v450_v4, %v4175_v24  ;;  %v597_v7 = vmul.f32 %v531_v20, %v4339_v14  ;;  %v596_v29 = vmul.f32 %v531_v20, %v4336_v13  ;;  %v613_v27 = vmul.f32 %v563_v19, %v4339_v14  ;;  %v3754_v12 = vld [vmem:[#allocation5 + $0x2ec] ss:$16 sps:$4 sm:$0xff]   ;;  %v3755_v20 = vld [vmem:[#allocation5 + $0x300] ss:$16 sps:$4 sm:$0xff]  }
 0x1ef   :  { %v612_v11 = vmul.f32 %v563_v19, %v4336_v13  ;;  %v454_v28 = vcombine.high %v450_v4, %v450_v4  ;;  %v567_v33 = vrot.slane %v503_v32, %v4175_v24  ;;  %v3745_v4 = vld [vmem:[#allocation5 + $0x2c4] ss:$16 sps:$4 sm:$0xff]   ;;  %v3766_v23 = vld [vmem:[#allocation5 + $0x32c] ss:$16 sps:$4 sm:$0xff]   ;;  %v3761_v19 = vld [vmem:[#allocation5 + $0x320] ss:$16 sps:$4 sm:$0xff]  }
 0x1f0   :  { %666 = vadd.xlane.f32.xlu1 %v609_v2  ;;  %664 = vadd.xlane.f32.xlu0 %v608_v3  ;;  %v595_v9 = vmul.f32 %v527_v5, %v4339_v14  ;;  %v594_v10 = vmul.f32 %v527_v5, %v4336_v13  ;;  %v3737_v2 = vld [vmem:[#allocation5 + $0x2a0] ss:$16 sps:$4 sm:$0xff]   ;;  %v3740_v3 = vld [vmem:[#allocation5 + $0x2a8] ss:$16 sps:$4 sm:$0xff]   ;;  %v3748_v5 = vld [vmem:[#allocation5 + $0x2cc] ss:$16 sps:$4 sm:$0xff]  }
 0x1f1   :  { %v535_v26 = vrot.slane %v454_v28, %v4175_v24  ;;  %v615_v18 = vmul.f32 %v567_v33, %v4339_v14  ;;  %v614_v22 = vmul.f32 %v567_v33, %v4336_v13  ;;  %v3772_v28 = vld [vmem:[#allocation5 + $0x34c] ss:$16 sps:$4 sm:$0xff]   ;;  %v3773_v33 = vld [vmem:[#allocation5 + $0x360] ss:$16 sps:$4 sm:$0xff]  }
 0x1f2   :  { %v3778_v32 = vld [vmem:[#allocation5 + $0x36c] ss:$16 sps:$4 sm:$0xff]  }
 0x1f3   :  { %v599_v38 = vmul.f32 %v535_v26, %v4339_v14  ;;  %v598_v30 = vmul.f32 %v535_v26, %v4336_v13  ;;  %v3715_v13 = vld [vmem:[#allocation5 + $0x224] ss:$16 sps:$4 sm:$0xff]   ;;  %v3718_v14 = vld [vmem:[#allocation5 + $0x22c] ss:$16 sps:$4 sm:$0xff]   ;;  %v3767_v26 = vld [vmem:[#allocation5 + $0x340] ss:$16 sps:$4 sm:$0xff]  }
 0x1f4   :  { %638 = vadd.xlane.f32.xlu1 %v595_v9  ;;  %636 = vadd.xlane.f32.xlu0 %v594_v10  ;;  %v3746_v9 = vld [vmem:[#allocation5 + $0x2c8] ss:$16 sps:$4 sm:$0xff]   ;;  %v3751_v10 = vld [vmem:[#allocation5 + $0x2e4] ss:$16 sps:$4 sm:$0xff]  }
 0x1f8   :  { %670 = vadd.xlane.f32.xlu1 %v611_v16  ;;  %668 = vadd.xlane.f32.xlu0 %v610_v17  ;;  %v3757_v16 = vld [vmem:[#allocation5 + $0x304] ss:$16 sps:$4 sm:$0xff]   ;;  %v3760_v17 = vld [vmem:[#allocation5 + $0x30c] ss:$16 sps:$4 sm:$0xff]  }
 0x1fc   :  { %642 = vadd.xlane.f32.xlu1 %v597_v7  ;;  %640 = vadd.xlane.f32.xlu0 %v596_v29  ;;  %v3758_v7 = vld [vmem:[#allocation5 + $0x308] ss:$16 sps:$4 sm:$0xff]   ;;  %v3763_v29 = vld [vmem:[#allocation5 + $0x324] ss:$16 sps:$4 sm:$0xff]  }
 0x200   :  { %674 = vadd.xlane.f32.xlu1 %v613_v27  ;;  %672 = vadd.xlane.f32.xlu0 %v612_v11  ;;  %v3764_v27 = vld [vmem:[#allocation5 + $0x328] ss:$16 sps:$4 sm:$0xff]   ;;  %v3769_v11 = vld [vmem:[#allocation5 + $0x344] ss:$16 sps:$4 sm:$0xff]  }
 0x204   :  { %646 = vadd.xlane.f32.xlu1 %v599_v38  ;;  %644 = vadd.xlane.f32.xlu0 %v598_v30  ;;  %v3770_v38 = vld [vmem:[#allocation5 + $0x348] ss:$16 sps:$4 sm:$0xff]   ;;  %v3775_v30 = vld [vmem:[#allocation5 + $0x364] ss:$16 sps:$4 sm:$0xff]  }
 0x208   :  { %678 = vadd.xlane.f32.xlu1 %v615_v18  ;;  %676 = vadd.xlane.f32.xlu0 %v614_v22  ;;  %v3776_v18 = vld [vmem:[#allocation5 + $0x368] ss:$16 sps:$4 sm:$0xff]   ;;  %v3781_v22 = vld [vmem:[#allocation5 + $0x384] ss:$16 sps:$4 sm:$0xff]  }
 0x280   :  { %v964_v34 = vpop.f32.mrb[0].mxu0  ;;  %v1007_v37 = vpop.f32.mrb[0].mxu1 }
 0x281   :  { %v966_v21 = vpop.f32.mrb[1].mxu0  ;;  %v1009_v36 = vpop.f32.mrb[1].mxu1 }
 0x282   :  { %v968_v25 = vpop.f32.mrb[2].mxu0  ;;  %v1011_v39 = vpop.f32.mrb[2].mxu1 }
 0x283   :  { %v1016_v41 = vpack.c.bf16 %v968_v25, %v964_v34  ;;  %v4403_v42 = vpack.c.bf16 %v1011_v39, %v1007_v37  ;;  %v970_v43 = vpop.f32.mrb[3].mxu0  ;;  %v1013_v44 = vpop.f32.mrb[3].mxu1  ;;  %v3784_v34 = vld [vmem:[#allocation5 + $0x38c] ss:$16 sps:$4 sm:$0xff]   ;;  %v3779_v37 = vld [vmem:[#allocation5 + $0x380] ss:$16 sps:$4 sm:$0xff]  }
 0x284   :  { %v1017_v45 = vpack.c.bf16 %v970_v43, %v966_v21  ;;  %v1019_v46 = vpack.c.bf16 %v1013_v44, %v1009_v36  ;;  %v3782_v21 = vld [vmem:[#allocation5 + $0x388] ss:$16 sps:$4 sm:$0xff]   ;;  %v3787_v36 = vld [vmem:[#allocation5 + $0x3a4] ss:$16 sps:$4 sm:$0xff]   ;;  %v3790_v25 = vld [vmem:[#allocation5 + $0x3ac] ss:$16 sps:$4 sm:$0xff]  }
 0x285   :  { %v3785_v39 = vld [vmem:[#allocation5 + $0x3a0] ss:$16 sps:$4 sm:$0xff]   ;;  %v3793_v43 = vld [vmem:[#allocation5 + $0x3c4] ss:$16 sps:$4 sm:$0xff]   ;;  %v3796_v44 = vld [vmem:[#allocation5 + $0x3cc] ss:$16 sps:$4 sm:$0xff]  }
 0x286   :  { %1842 = vmatprep.mubr.bf16.mxu0 %v1017_v45  ;;  %1928 = vmatprep.mubr.bf16.mxu1 %v1017_v45  ;;  %v3791_v45 = vld [vmem:[#allocation5 + $0x3c0] ss:$16 sps:$4 sm:$0xff]  }
 0x287   :  { %1843 = vmatmul.mubr.bf16.vlgmr.msra.gmra.mrb[4].mxu0 %v1016_v41  ;;  %1929 = vmatmul.mubr.bf16.vlgmr.msra.gmra.mrb[4].mxu1 %v1016_v41  ;;  %v3788_v41 = vld [vmem:[#allocation5 + $0x3a8] ss:$16 sps:$4 sm:$0xff]  }
 0x288   :  { %1854 = vmatpush1.bf16.msra.mxu0 %v3707_v47  ;;  %1940 = vmatpush1.bf16.msra.mxu1 %v3710_v35  ;;  %v3799_v47 = vld [vmem:[#allocation5 + $0x3e4] ss:$16 sps:$4 sm:$0xff]   ;;  %v3802_v35 = vld [vmem:[#allocation5 + $0x3ec] ss:$16 sps:$4 sm:$0xff]  }
 0x289   :  { %1885 = vmatprep.mubr.bf16.mxu0 %v1019_v46  ;;  %1971 = vmatprep.mubr.bf16.mxu1 %v1019_v46  ;;  %v3794_v46 = vld [vmem:[#allocation5 + $0x3c8] ss:$16 sps:$4 sm:$0xff]  }
 0x28a   :  { %1855 = vmatprep.subr.bf16.mxu0 %v3715_v13  ;;  %1941 = vmatprep.subr.bf16.mxu1 %v3718_v14  ;;  %v3797_v13 = vld [vmem:[#allocation5 + $0x3e0] ss:$16 sps:$4 sm:$0xff]   ;;  %v3800_v14 = vld [vmem:[#allocation5 + $0x3e8] ss:$16 sps:$4 sm:$0xff]  }
 0x28c   :  { %1856 = vmatpush1.bf16.msra.mxu0 %v3713_v48  ;;  %1942 = vmatpush1.bf16.msra.mxu1 %v3716_v49  ;;  %v617_v48 = vpop.xlane.xlu0 %616  ;;  %v619_v49 = vpop.xlane.xlu1 %618 }
 0x28d   :  { %1857 = vmatprep.subr.bf16.mxu0 %v3721_v51  ;;  %1943 = vmatprep.subr.bf16.mxu1 %v3724_v0 }
 0x290   :  { %1858 = vmatpush1.bf16.msra.mxu0 %v3719_v52  ;;  %1944 = vmatpush1.bf16.msra.mxu1 %v3722_v53  ;;  %v621_v51 = vpop.xlane.xlu0 %620  ;;  %v623_v0 = vpop.xlane.xlu1 %622 }
 0x291   :  { %1859 = vmatprep.subr.bf16.mxu0 %v3727_v54  ;;  %1945 = vmatprep.subr.bf16.mxu1 %v3730_v55 }
 0x294   :  { %1860 = vmatpush1.bf16.msra.mxu0 %v3725_v56  ;;  %1946 = vmatpush1.bf16.msra.mxu1 %v3728_v31  ;;  %v651_v52 = vpop.xlane.xlu1 %650  ;;  %v649_v53 = vpop.xlane.xlu0 %648 }
 0x295   :  { %1861 = vmatprep.subr.bf16.mxu0 %v3733_v58  ;;  %1947 = vmatprep.subr.bf16.mxu1 %v3736_v59 }
 0x298   :  { %1862 = vmatpush1.bf16.msra.mxu0 %v3731_v60  ;;  %1948 = vmatpush1.bf16.msra.mxu1 %v3734_v61  ;;  %v655_v54 = vpop.xlane.xlu1 %654  ;;  %v653_v55 = vpop.xlane.xlu0 %652 }
 0x299   :  { %1863 = vmatprep.subr.bf16.mxu0 %v3739_v62  ;;  %1949 = vmatprep.subr.bf16.mxu1 %v3742_v63 }
 0x29c   :  { %1864 = vmatpush1.bf16.msra.mxu0 %v3737_v2  ;;  %1950 = vmatpush1.bf16.msra.mxu1 %v3740_v3  ;;  %v627_v56 = vpop.xlane.xlu1 %626  ;;  %v625_v31 = vpop.xlane.xlu0 %624 }
 0x29d   :  { %1865 = vmatprep.subr.bf16.mxu0 %v3745_v4  ;;  %1951 = vmatprep.subr.bf16.mxu1 %v3748_v5 }
 0x2a0   :  { %1866 = vmatpush1.bf16.msra.mxu0 %v3743_v8  ;;  %1952 = vmatpush1.bf16.msra.mxu1 %v3746_v9  ;;  %v659_v58 = vpop.xlane.xlu1 %658  ;;  %v657_v59 = vpop.xlane.xlu0 %656  ;;  %v1990_v8 = vpack.c.bf16 %v619_v49, %v617_v48  ;;  %v1991_v9 = vpack.c.bf16 %v623_v0, %v621_v51 }
 0x2a1   :  { %1867 = vmatprep.subr.bf16.mxu0 %v3751_v10  ;;  %1953 = vmatprep.subr.bf16.mxu1 %v3754_v12  ;;  %v1998_v10 = vpack.c.bf16 %v651_v52, %v649_v53  ;;  %v1999_v12 = vpack.c.bf16 %v655_v54, %v653_v55 }
 0x2a4   :  { %1868 = vmatpush1.bf16.msra.mxu0 %v3749_v6  ;;  %1954 = vmatpush1.bf16.msra.mxu1 %v3752_v15  ;;  %v631_v60 = vpop.xlane.xlu1 %630  ;;  %v629_v61 = vpop.xlane.xlu0 %628  ;;  %v2026_v6 = vunpack.c.l.b16 %v1990_v8  ;;  %v2027_v15 = vunpack.c.h.b16 %v1990_v8 }
 0x2a5   :  { %1869 = vmatprep.subr.bf16.mxu0 %v3757_v16  ;;  %1955 = vmatprep.subr.bf16.mxu1 %v3760_v17  ;;  %v2028_v16 = vunpack.c.l.b16 %v1991_v9  ;;  %v2029_v17 = vunpack.c.h.b16 %v1991_v9 }
 0x2a8   :  { %1870 = vmatpush1.bf16.msra.mxu0 %v3755_v20  ;;  %1956 = vmatpush1.bf16.msra.mxu1 %v3758_v7  ;;  %v663_v62 = vpop.xlane.xlu1 %662 }
 0x2a9   :  { %1871 = vmatprep.subr.bf16.mxu0 %v3763_v29  ;;  %1957 = vmatprep.subr.bf16.mxu1 %v3766_v23  ;;  %v2042_v29 = vunpack.c.l.b16 %v1998_v10  ;;  %v2043_v23 = vunpack.c.h.b16 %v1998_v10 }
 0x2ac   :  { %1872 = vmatpush1.bf16.msra.mxu0 %v3761_v19  ;;  %1958 = vmatpush1.bf16.msra.mxu1 %v3764_v27  ;;  %v635_v63 = vpop.xlane.xlu1 %634  ;;  %v2044_v19 = vunpack.c.l.b16 %v1999_v12  ;;  %v2045_v27 = vunpack.c.h.b16 %v1999_v12 }
 0x2ad   :  { %1873 = vmatprep.subr.bf16.mxu0 %v3769_v11  ;;  %1959 = vmatprep.subr.bf16.mxu1 %v3772_v28  ;;  %v1992_v11 = vpack.c.bf16 %v627_v56, %v625_v31  ;;  %v2000_v28 = vpack.c.bf16 %v659_v58, %v657_v59 }
 0x2b0   :  { %1874 = vmatpush1.bf16.msra.mxu0 %v3767_v26  ;;  %1960 = vmatpush1.bf16.msra.mxu1 %v3770_v38  ;;  %v667_v3 = vpop.xlane.xlu1 %666  ;;  %v2061_v26 = vrot.slane %v2026_v6, %v4259_v40  ;;  %v2065_v38 = vrot.slane %v2027_v15, %v4262_v50 }
 0x2b1   :  { %1875 = vmatprep.subr.bf16.mxu0 %v3775_v30  ;;  %1961 = vmatprep.subr.bf16.mxu1 %v3778_v32  ;;  %v2070_v30 = vrot.slane %v2028_v16, %v4259_v40  ;;  %v2074_v32 = vrot.slane %v2029_v17, %v4262_v50 }
 0x2b4   :  { %1876 = vmatpush1.bf16.msra.mxu0 %v3773_v33  ;;  %1962 = vmatpush1.bf16.msra.mxu1 %v3776_v18  ;;  %v639_v4 = vpop.xlane.xlu1 %638  ;;  %v2133_v33 = vrot.slane %v2042_v29, %v4259_v40  ;;  %v2137_v18 = vrot.slane %v2043_v23, %v4262_v50 }
 0x2b5   :  { %1877 = vmatprep.subr.bf16.mxu0 %v3781_v22  ;;  %1963 = vmatprep.subr.bf16.mxu1 %v3784_v34  ;;  %v2142_v22 = vrot.slane %v2044_v19, %v4259_v40  ;;  %v2146_v34 = vrot.slane %v2045_v27, %v4262_v50 }
 0x2b8   :  { %1878 = vmatpush1.bf16.msra.mxu0 %v3779_v37  ;;  %1964 = vmatpush1.bf16.msra.mxu1 %v3782_v21  ;;  %v671_v20 = vpop.xlane.xlu1 %670  ;;  %v2030_v37 = vunpack.c.l.b16 %v1992_v11  ;;  %v2031_v21 = vunpack.c.h.b16 %v1992_v11 }
 0x2b9   :  { %1879 = vmatprep.subr.bf16.mxu0 %v3787_v36  ;;  %1965 = vmatprep.subr.bf16.mxu1 %v3790_v25  ;;  %v2046_v36 = vunpack.c.l.b16 %v2000_v28  ;;  %v2047_v25 = vunpack.c.h.b16 %v2000_v28 }
 0x2bb   :  { %v2151_v48 = vrot.slane %v2046_v36, %v4259_v40  ;;  %v2155_v49 = vrot.slane %v2047_v25, %v4262_v50 }
 0x2bc   :  { %1880 = vmatpush1.bf16.msra.mxu0 %v3785_v39  ;;  %1966 = vmatpush1.bf16.msra.mxu1 %v3788_v41  ;;  %v643_v39 = vpop.xlane.xlu1 %642 }
 0x2bd   :  { %1881 = vmatprep.subr.bf16.mxu0 %v3793_v43  ;;  %1967 = vmatprep.subr.bf16.mxu1 %v3796_v44  ;;  %v1993_v43 = vpack.c.bf16 %v631_v60, %v629_v61  ;;  %v2156_v61 = vsel %vm767_vm6, %v2155_v49, %v2151_v48  ;;  %v1148_v49 = vld [vmem:[%s4520_s5] sm:$0xf] }
 0x2bf   :  { %v2032_v51 = vunpack.c.l.b16 %v1993_v43  ;;  %v2033_v0 = vunpack.c.h.b16 %v1993_v43 }
 0x2c0   :  { %1882 = vmatpush1.bf16.msra.mxu0 %v3791_v45  ;;  %1968 = vmatpush1.bf16.msra.mxu1 %v3794_v46  ;;  %v2066_v45 = vsel %vm767_vm6, %v2065_v38, %v2061_v26  ;;  %v2075_v46 = vsel %vm767_vm6, %v2074_v32, %v2070_v30  ;;  %v675_v56 = vpop.xlane.xlu1 %674 }
 0x2c1   :  { %1883 = vmatprep.subr.bf16.mxu0 %v3799_v47  ;;  %1969 = vmatprep.subr.bf16.mxu1 %v3802_v35  ;;  %v2138_v47 = vsel %vm767_vm6, %v2137_v18, %v2133_v33  ;;  %v2147_v35 = vsel %vm767_vm6, %v2146_v34, %v2142_v22  ;;  %v2202_v58 = vsel %vm904_vm7, %v2075_v46, %v2066_v45 }
 0x2c2   :  { %v2209_v59 = vsel %vm904_vm7, %v2147_v35, %v2138_v47 }
 0x2c3   :  { %v2210_v17 = vsel %vm906_vm8, %v2156_v61, %v2209_v59 }
 0x2c4   :  { %1884 = vmatpush1.bf16.msra.mxu0 %v3797_v13  ;;  %1970 = vmatpush1.bf16.msra.mxu1 %v3800_v14  ;;  %v2079_v13 = vrot.slane %v2030_v37, %v4259_v40  ;;  %v2083_v14 = vrot.slane %v2031_v21, %v4262_v50  ;;  %v647_v6 = vpop.xlane.xlu1 %646 }
 0x2c6   :  { %v2084_v60 = vsel %vm767_vm6, %v2083_v14, %v2079_v13  ;;  %v1160_v13 = vsub.s32 2, %v4148_v1 }
 0x2c7   :  { %1886 = vmatmul.mubr.bf16.vlgmr.msra.gmra.mrb[4].mxu0 %v4403_v42  ;;  %1972 = vmatmul.mubr.bf16.vlgmr.msra.gmra.mrb[4].mxu1 %v4403_v42  ;;  %v661_v42 = vpop.xlane.xlu0 %660  ;;  %v2203_v16 = vsel %vm906_vm8, %v2084_v60, %v2202_v58  ;;  %v1153_v60 = vrot.slane %v1148_v49, %v4175_v24 }
 0x2c8   :  { %2252 = vmatprep.mubr.bf16.mxu0 %v4083_v57  ;;  %2295 = vmatprep.mubr.bf16.mxu1 %v4083_v57  ;;  %v2001_v44 = vpack.c.bf16 %v663_v62, %v661_v42  ;;  %v2088_v62 = vrot.slane %v2032_v51, %v4259_v40  ;;  %v2092_v42 = vrot.slane %v2033_v0, %v4262_v50  ;;  %v679_v22 = vpop.xlane.xlu1 %678  ;;  %v1156_v51 = vsub.s32 1, %v4148_v1 }
 0x2c9   :  { %v1164_v0 = vsub.s32 3, %v4148_v1  ;;  %v1161_v61 = vrot.slane %v1148_v49, %v1160_v13 }
 0x2ca   :  { %v2048_v52 = vunpack.c.l.b16 %v2001_v44  ;;  %v2049_v53 = vunpack.c.h.b16 %v2001_v44  ;;  %v2093_v29 = vsel %vm767_vm6, %v2092_v42, %v2088_v62  ;;  %v1157_v62 = vrot.slane %v1148_v49, %v1156_v51 }
 0x2cb   :  { %v633_v2 = vpop.xlane.xlu0 %632  ;;  %v2204_v30 = vsel %vm908_vm9, %v2093_v29, %v2203_v16  ;;  %v1165_v42 = vrot.slane %v1148_v49, %v1164_v0 }
 0x2cc   :  { %v1994_v54 = vpack.c.bf16 %v635_v63, %v633_v2  ;;  %v2160_v8 = vrot.slane %v2048_v52, %v4259_v40  ;;  %v2164_v9 = vrot.slane %v2049_v53, %v4262_v50 }
 0x2ce   :  { %v2034_v63 = vunpack.c.l.b16 %v1994_v54  ;;  %v2035_v2 = vunpack.c.h.b16 %v1994_v54  ;;  %v2165_v23 = vsel %vm767_vm6, %v2164_v9, %v2160_v8 }
 0x2cf   :  { %v665_v57 = vpop.xlane.xlu0 %664  ;;  %v2211_v32 = vsel %vm908_vm9, %v2165_v23, %v2210_v17 }
 0x2d0   :  { %v2002_v55 = vpack.c.bf16 %v667_v3, %v665_v57  ;;  %v2097_v19 = vrot.slane %v2034_v63, %v4259_v40  ;;  %v2101_v27 = vrot.slane %v2035_v2, %v4262_v50 }
 0x2d2   :  { %v2050_v3 = vunpack.c.l.b16 %v2002_v55  ;;  %v2051_v57 = vunpack.c.h.b16 %v2002_v55  ;;  %v2102_v33 = vsel %vm767_vm6, %v2101_v27, %v2097_v19 }
 0x2d3   :  { %v637_v5 = vpop.xlane.xlu0 %636  ;;  %v2205_v47 = vsel %vm910_vm10, %v2102_v33, %v2204_v30 }
 0x2d4   :  { %v1995_v10 = vpack.c.bf16 %v639_v4, %v637_v5  ;;  %v2169_v11 = vrot.slane %v2050_v3, %v4259_v40  ;;  %v2173_v28 = vrot.slane %v2051_v57, %v4262_v50 }
 0x2d6   :  { %v2036_v4 = vunpack.c.l.b16 %v1995_v10  ;;  %v2037_v5 = vunpack.c.h.b16 %v1995_v10  ;;  %v2174_v18 = vsel %vm767_vm6, %v2173_v28, %v2169_v11 }
 0x2d7   :  { %v669_v7 = vpop.xlane.xlu0 %668  ;;  %v2212_v35 = vsel %vm910_vm10, %v2174_v18, %v2211_v32 }
 0x2d8   :  { %v2003_v12 = vpack.c.bf16 %v671_v20, %v669_v7  ;;  %v2106_v37 = vrot.slane %v2036_v4, %v4259_v40  ;;  %v2110_v21 = vrot.slane %v2037_v5, %v4262_v50 }
 0x2da   :  { %v2052_v20 = vunpack.c.l.b16 %v2003_v12  ;;  %v2053_v7 = vunpack.c.h.b16 %v2003_v12  ;;  %v2111_v14 = vsel %vm767_vm6, %v2110_v21, %v2106_v37 }
 0x2db   :  { %v641_v41 = vpop.xlane.xlu0 %640  ;;  %v2206_v8 = vsel %vm912_vm11, %v2111_v14, %v2205_v47  ;;  %v3803_v14 = vld [vmem:[#allocation5 + $0x400] ss:$16 sps:$4 sm:$0xff]  }
 0x2dc   :  { %v1996_v26 = vpack.c.bf16 %v643_v39, %v641_v41  ;;  %v2178_v36 = vrot.slane %v2052_v20, %v4259_v40  ;;  %v2182_v25 = vrot.slane %v2053_v7, %v4262_v50 }
 0x2de   :  { %v2038_v39 = vunpack.c.l.b16 %v1996_v26  ;;  %v2039_v41 = vunpack.c.h.b16 %v1996_v26  ;;  %v2183_v48 = vsel %vm767_vm6, %v2182_v25, %v2178_v36 }
 0x2df   :  { %v673_v31 = vpop.xlane.xlu0 %672  ;;  %v2213_v9 = vsel %vm912_vm11, %v2183_v48, %v2212_v35  ;;  %v3806_v48 = vld [vmem:[#allocation5 + $0x408] ss:$16 sps:$4 sm:$0xff]  }
 0x2e0   :  { %v2004_v38 = vpack.c.bf16 %v675_v56, %v673_v31  ;;  %v2115_v52 = vrot.slane %v2038_v39, %v4259_v40  ;;  %v2119_v53 = vrot.slane %v2039_v41, %v4262_v50 }
 0x2e2   :  { %v2054_v43 = vunpack.c.l.b16 %v2004_v38  ;;  %v2055_v44 = vunpack.c.h.b16 %v2004_v38  ;;  %v2120_v63 = vsel %vm767_vm6, %v2119_v53, %v2115_v52  ;;  %v3811_v52 = vld [vmem:[#allocation5 + $0x424] ss:$16 sps:$4 sm:$0xff]   ;;  %v3814_v53 = vld [vmem:[#allocation5 + $0x42c] ss:$16 sps:$4 sm:$0xff]  }
 0x2e3   :  { %v645_v15 = vpop.xlane.xlu0 %644  ;;  %v2207_v4 = vsel %vm914_vm12, %v2120_v63, %v2206_v8  ;;  %v3829_v8 = vld [vmem:[#allocation5 + $0x484] ss:$16 sps:$4 sm:$0xff]   ;;  %v3827_v63 = vld [vmem:[#allocation5 + $0x480] ss:$16 sps:$4 sm:$0xff]  }
 0x2e4   :  { %v1997_v45 = vpack.c.bf16 %v647_v6, %v645_v15  ;;  %v2187_v54 = vrot.slane %v2054_v43, %v4259_v40  ;;  %v2191_v55 = vrot.slane %v2055_v44, %v4262_v50 }
 0x2e6   :  { %v2040_v56 = vunpack.c.l.b16 %v1997_v45  ;;  %v2041_v31 = vunpack.c.h.b16 %v1997_v45  ;;  %v2192_v2 = vsel %vm767_vm6, %v2191_v55, %v2187_v54  ;;  %v3805_v45 = vld [vmem:[#allocation5 + $0x404] ss:$16 sps:$4 sm:$0xff]   ;;  %v3809_v54 = vld [vmem:[#allocation5 + $0x420] ss:$16 sps:$4 sm:$0xff]   ;;  %v3812_v55 = vld [vmem:[#allocation5 + $0x428] ss:$16 sps:$4 sm:$0xff]  }
 0x2e7   :  { %v677_v34 = vpop.xlane.xlu0 %676  ;;  %v2214_v5 = vsel %vm914_vm12, %v2192_v2, %v2213_v9  ;;  %v3832_v9 = vld [vmem:[#allocation5 + $0x48c] ss:$16 sps:$4 sm:$0xff]   ;;  %v3830_v2 = vld [vmem:[#allocation5 + $0x488] ss:$16 sps:$4 sm:$0xff]  }
 0x2e8   :  { %v2005_v46 = vpack.c.bf16 %v679_v22, %v677_v34  ;;  %v2124_v3 = vrot.slane %v2040_v56, %v4259_v40  ;;  %v2128_v57 = vrot.slane %v2041_v31, %v4262_v50  ;;  %v3817_v56 = vld [vmem:[#allocation5 + $0x444] ss:$16 sps:$4 sm:$0xff]   ;;  %v3820_v31 = vld [vmem:[#allocation5 + $0x44c] ss:$16 sps:$4 sm:$0xff]  }
 0x2ea   :  { %v2056_v58 = vunpack.c.l.b16 %v2005_v46  ;;  %v2057_v59 = vunpack.c.h.b16 %v2005_v46  ;;  %v3808_v46 = vld [vmem:[#allocation5 + $0x40c] ss:$16 sps:$4 sm:$0xff]  }
 0x2ec   :  { %v2196_v10 = vrot.slane %v2056_v58, %v4259_v40  ;;  %v2200_v12 = vrot.slane %v2057_v59, %v4262_v50  ;;  %v2129_v50 = vsel %vm767_vm6, %v2128_v57, %v2124_v3  ;;  %v3815_v58 = vld [vmem:[#allocation5 + $0x440] ss:$16 sps:$4 sm:$0xff]   ;;  %v3818_v59 = vld [vmem:[#allocation5 + $0x448] ss:$16 sps:$4 sm:$0xff]   ;;  %v3835_v3 = vld [vmem:[#allocation5 + $0x4a4] ss:$16 sps:$4 sm:$0xff]  }
 0x2ed   :  { %v2208_v47 = vsel %vm916_vm13, %v2129_v50, %v2207_v4  ;;  %v3838_v57 = vld [vmem:[#allocation5 + $0x4ac] ss:$16 sps:$4 sm:$0xff]   ;;  %v3851_v4 = vld [vmem:[#allocation5 + $0x500] ss:$16 sps:$4 sm:$0xff]   ;;  %v3865_v50 = vld [vmem:[#allocation5 + $0x544] ss:$16 sps:$4 sm:$0xff]  }
 0x2ee   :  { %v2201_v38 = vsel %vm767_vm6, %v2200_v12, %v2196_v10  ;;  %v3833_v10 = vld [vmem:[#allocation5 + $0x4a0] ss:$16 sps:$4 sm:$0xff]   ;;  %v3836_v12 = vld [vmem:[#allocation5 + $0x4a8] ss:$16 sps:$4 sm:$0xff]  }
 0x2ef   :  { %v2215_v35 = vsel %vm916_vm13, %v2201_v38, %v2214_v5  ;;  %v3854_v5 = vld [vmem:[#allocation5 + $0x508] ss:$16 sps:$4 sm:$0xff]   ;;  %v3868_v38 = vld [vmem:[#allocation5 + $0x54c] ss:$16 sps:$4 sm:$0xff]  }
 0x2f0   :  { %v2216_v49 = vpack.c.b16 %v2215_v35, %v2208_v47  ;;  %v3887_v47 = vld [vmem:[#allocation5 + $0x5c0] ss:$16 sps:$4 sm:$0xff]   ;;  %v3890_v35 = vld [vmem:[#allocation5 + $0x5c8] ss:$16 sps:$4 sm:$0xff]  }
 0x39a   :  { %v1887_v6 = vpop.f32.mrb[4].mxu0  ;;  %v1973_v15 = vpop.f32.mrb[4].mxu1 }
 0x39b   :  { %v3569_v16 = vadd.f32 %v1887_v6, %v1153_v60  ;;  %v3573_v17 = vadd.f32 %v1973_v15, %v1161_v61  ;;  %v1889_v29 = vpop.f32.mrb[5].mxu0  ;;  %v1975_v23 = vpop.f32.mrb[5].mxu1  ;;  %v3841_v6 = vld [vmem:[#allocation5 + $0x4c4] ss:$16 sps:$4 sm:$0xff]   ;;  %v3844_v15 = vld [vmem:[#allocation5 + $0x4cc] ss:$16 sps:$4 sm:$0xff]  }
 0x39c   :  { %v3570_v19 = vadd.f32 %v1889_v29, %v1157_v62  ;;  %v3574_v27 = vadd.f32 %v1975_v23, %v1165_v42  ;;  %v1891_v11 = vpop.f32.mrb[6].mxu0  ;;  %v1977_v28 = vpop.f32.mrb[6].mxu1  ;;  %v3847_v29 = vld [vmem:[#allocation5 + $0x4e4] ss:$16 sps:$4 sm:$0xff]   ;;  %v3850_v23 = vld [vmem:[#allocation5 + $0x4ec] ss:$16 sps:$4 sm:$0xff]  }
 0x39d   :  { %v3571_v20 = vadd.f32 %v1891_v11, %v1153_v60  ;;  %v3575_v7 = vadd.f32 %v1977_v28, %v1161_v61  ;;  %v1893_v26 = vpop.f32.mrb[7].mxu0  ;;  %v1979_v40 = vpop.f32.mrb[7].mxu1  ;;  %v1982_v33 = vmax.f32 %v3569_v16, 0.0  ;;  %v1984_v18 = vmax.f32 %v3573_v17, 0.0  ;;  %v3823_v60 = vld [vmem:[#allocation5 + $0x464] ss:$16 sps:$4 sm:$0xff]  }
 0x39e   :  { %v3572_v30 = vadd.f32 %v1893_v26, %v1157_v62  ;;  %v3576_v32 = vadd.f32 %v1979_v40, %v1165_v42  ;;  %v1983_v37 = vmax.f32 %v3570_v19, 0.0  ;;  %v1985_v21 = vmax.f32 %v3574_v27, 0.0  ;;  %v3826_v61 = vld [vmem:[#allocation5 + $0x46c] ss:$16 sps:$4 sm:$0xff]   ;;  %v3821_v62 = vld [vmem:[#allocation5 + $0x460] ss:$16 sps:$4 sm:$0xff]  }
 0x39f   :  { %v1986_v22 = vmax.f32 %v3571_v20, 0.0  ;;  %v1988_v34 = vmax.f32 %v3575_v7, 0.0  ;;  %v3824_v42 = vld [vmem:[#allocation5 + $0x468] ss:$16 sps:$4 sm:$0xff]   ;;  %v3839_v16 = vld [vmem:[#allocation5 + $0x4c0] ss:$16 sps:$4 sm:$0xff]  }
 0x3a0   :  { %v1987_v36 = vmax.f32 %v3572_v30, 0.0  ;;  %v1989_v25 = vmax.f32 %v3576_v32, 0.0  ;;  %v3842_v17 = vld [vmem:[#allocation5 + $0x4c8] ss:$16 sps:$4 sm:$0xff]   ;;  %v3845_v19 = vld [vmem:[#allocation5 + $0x4e0] ss:$16 sps:$4 sm:$0xff]  }
 0x3a1   :  { %v2006_v39 = vpack.c.bf16 %v1986_v22, %v1982_v33  ;;  %v2008_v41 = vpack.c.bf16 %v1988_v34, %v1984_v18  ;;  %v3848_v27 = vld [vmem:[#allocation5 + $0x4e8] ss:$16 sps:$4 sm:$0xff]   ;;  %v3853_v11 = vld [vmem:[#allocation5 + $0x504] ss:$16 sps:$4 sm:$0xff]   ;;  %v3856_v28 = vld [vmem:[#allocation5 + $0x50c] ss:$16 sps:$4 sm:$0xff]  }
 0x3a2   :  { %v2007_v43 = vpack.c.bf16 %v1987_v36, %v1983_v37  ;;  %v2009_v44 = vpack.c.bf16 %v1989_v25, %v1985_v21  ;;  %v3859_v20 = vld [vmem:[#allocation5 + $0x524] ss:$16 sps:$4 sm:$0xff]   ;;  %v3862_v7 = vld [vmem:[#allocation5 + $0x52c] ss:$16 sps:$4 sm:$0xff]   ;;  %v3857_v26 = vld [vmem:[#allocation5 + $0x520] ss:$16 sps:$4 sm:$0xff]  }
 0x3a3   :  { %v3860_v40 = vld [vmem:[#allocation5 + $0x528] ss:$16 sps:$4 sm:$0xff]   ;;  %v3863_v30 = vld [vmem:[#allocation5 + $0x540] ss:$16 sps:$4 sm:$0xff]   ;;  %v3871_v33 = vld [vmem:[#allocation5 + $0x564] ss:$16 sps:$4 sm:$0xff]  }
 0x3a4   :  { %2220 = vmatprep.subr.bf16.mxu0 %v2007_v43  ;;  %2263 = vmatprep.subr.bf16.mxu1 %v2009_v44  ;;  %v3866_v32 = vld [vmem:[#allocation5 + $0x548] ss:$16 sps:$4 sm:$0xff]   ;;  %v3874_v18 = vld [vmem:[#allocation5 + $0x56c] ss:$16 sps:$4 sm:$0xff]   ;;  %v3869_v22 = vld [vmem:[#allocation5 + $0x560] ss:$16 sps:$4 sm:$0xff]  }
 0x3a5   :  { %2221 = vmatpush1.bf16.msra.mxu0 %v2006_v39  ;;  %2264 = vmatpush1.bf16.msra.mxu1 %v2008_v41  ;;  %v3872_v34 = vld [vmem:[#allocation5 + $0x568] ss:$16 sps:$4 sm:$0xff]   ;;  %v3877_v37 = vld [vmem:[#allocation5 + $0x584] ss:$16 sps:$4 sm:$0xff]   ;;  %v3880_v21 = vld [vmem:[#allocation5 + $0x58c] ss:$16 sps:$4 sm:$0xff]  }
 0x3a6   :  { %3102 = vmatprep.subr.bf16.mxu0 %v3805_v45  ;;  %3188 = vmatprep.subr.bf16.mxu1 %v3808_v46  ;;  %v3875_v36 = vld [vmem:[#allocation5 + $0x580] ss:$16 sps:$4 sm:$0xff]   ;;  %v3878_v25 = vld [vmem:[#allocation5 + $0x588] ss:$16 sps:$4 sm:$0xff]   ;;  %v3883_v39 = vld [vmem:[#allocation5 + $0x5a4] ss:$16 sps:$4 sm:$0xff]  }
 0x3a7   :  { %v3886_v41 = vld [vmem:[#allocation5 + $0x5ac] ss:$16 sps:$4 sm:$0xff]   ;;  %v3881_v43 = vld [vmem:[#allocation5 + $0x5a0] ss:$16 sps:$4 sm:$0xff]   ;;  %v3884_v44 = vld [vmem:[#allocation5 + $0x5a8] ss:$16 sps:$4 sm:$0xff]  }
 0x3a8   :  { %3438 = vmatmul.mubr.msk.bf16.vlgmr.msra.gmra.mrb[8].mxu0 %vm926_vm14, %v2216_v49  ;;  %3439 = vmatmul.mubr.msk.bf16.vlgmr.msra.gmra.mrb[8].mxu1 %vm926_vm14, %v2216_v49  ;;  %v3889_v45 = vld [vmem:[#allocation5 + $0x5c4] ss:$16 sps:$4 sm:$0xff]   ;;  %v3892_v46 = vld [vmem:[#allocation5 + $0x5cc] ss:$16 sps:$4 sm:$0xff]   ;;  %v3896_v49 = vld [vmem:[#allocation5 + $0x5e8] ss:$16 sps:$4 sm:$0xff]  }
 0x3a9   :  { %3103 = vmatpush1.bf16.msra.mxu0 %v3803_v14  ;;  %3189 = vmatpush1.bf16.msra.mxu1 %v3806_v48  ;;  %v3893_v14 = vld [vmem:[#allocation5 + $0x5e0] ss:$16 sps:$4 sm:$0xff]   ;;  %v3895_v48 = vld [vmem:[#allocation5 + $0x5e4] ss:$16 sps:$4 sm:$0xff]  }
 0x3aa   :  { %3104 = vmatprep.subr.bf16.mxu0 %v3811_v52  ;;  %3190 = vmatprep.subr.bf16.mxu1 %v3814_v53  ;;  %v3898_v52 = vld [vmem:[#allocation5 + $0x5ec] ss:$16 sps:$4 sm:$0xff]   ;;  %v3901_v53 = vld [vmem:[#allocation5 + $0x604] ss:$16 sps:$4 sm:$0xff]  }
 0x3ad   :  { %3105 = vmatpush1.bf16.msra.mxu0 %v3809_v54  ;;  %3191 = vmatpush1.bf16.msra.mxu1 %v3812_v55  ;;  %v3904_v54 = vld [vmem:[#allocation5 + $0x60c] ss:$16 sps:$4 sm:$0xff]  }
 0x3ae   :  { %3106 = vmatprep.subr.bf16.mxu0 %v3817_v56  ;;  %3192 = vmatprep.subr.bf16.mxu1 %v3820_v31 }
 0x3b1   :  { %3107 = vmatpush1.bf16.msra.mxu0 %v3815_v58  ;;  %3193 = vmatpush1.bf16.msra.mxu1 %v3818_v59 }
 0x3b2   :  { %3108 = vmatprep.subr.bf16.mxu0 %v3823_v60  ;;  %3194 = vmatprep.subr.bf16.mxu1 %v3826_v61 }
 0x3b5   :  { %3109 = vmatpush1.bf16.msra.mxu0 %v3821_v62  ;;  %3195 = vmatpush1.bf16.msra.mxu1 %v3824_v42 }
 0x3b6   :  { %3110 = vmatprep.subr.bf16.mxu0 %v3829_v8  ;;  %3196 = vmatprep.subr.bf16.mxu1 %v3832_v9 }
 0x3b9   :  { %3111 = vmatpush1.bf16.msra.mxu0 %v3827_v63  ;;  %3197 = vmatpush1.bf16.msra.mxu1 %v3830_v2  ;;  %v3899_v2 = vld [vmem:[#allocation5 + $0x600] ss:$16 sps:$4 sm:$0xff]  }
 0x3ba   :  { %3112 = vmatprep.subr.bf16.mxu0 %v3835_v3  ;;  %3198 = vmatprep.subr.bf16.mxu1 %v3838_v57  ;;  %v3902_v3 = vld [vmem:[#allocation5 + $0x608] ss:$16 sps:$4 sm:$0xff]   ;;  %v3907_v57 = vld [vmem:[#allocation5 + $0x624] ss:$16 sps:$4 sm:$0xff]  }
 0x3bd   :  { %3113 = vmatpush1.bf16.msra.mxu0 %v3833_v10  ;;  %3199 = vmatpush1.bf16.msra.mxu1 %v3836_v12  ;;  %v3910_v10 = vld [vmem:[#allocation5 + $0x62c] ss:$16 sps:$4 sm:$0xff]   ;;  %v3905_v12 = vld [vmem:[#allocation5 + $0x620] ss:$16 sps:$4 sm:$0xff]  }
 0x3be   :  { %3114 = vmatprep.subr.bf16.mxu0 %v3841_v6  ;;  %3200 = vmatprep.subr.bf16.mxu1 %v3844_v15  ;;  %v3908_v6 = vld [vmem:[#allocation5 + $0x628] ss:$16 sps:$4 sm:$0xff]   ;;  %v3913_v15 = vld [vmem:[#allocation5 + $0x644] ss:$16 sps:$4 sm:$0xff]  }
 0x3c1   :  { %3115 = vmatpush1.bf16.msra.mxu0 %v3839_v16  ;;  %3201 = vmatpush1.bf16.msra.mxu1 %v3842_v17  ;;  %v3916_v16 = vld [vmem:[#allocation5 + $0x64c] ss:$16 sps:$4 sm:$0xff]   ;;  %v3911_v17 = vld [vmem:[#allocation5 + $0x640] ss:$16 sps:$4 sm:$0xff]  }
 0x3c2   :  { %3116 = vmatprep.subr.bf16.mxu0 %v3847_v29  ;;  %3202 = vmatprep.subr.bf16.mxu1 %v3850_v23  ;;  %v3914_v29 = vld [vmem:[#allocation5 + $0x648] ss:$16 sps:$4 sm:$0xff]   ;;  %v3919_v23 = vld [vmem:[#allocation5 + $0x664] ss:$16 sps:$4 sm:$0xff]  }
 0x3c5   :  { %3117 = vmatpush1.bf16.msra.mxu0 %v3845_v19  ;;  %3203 = vmatpush1.bf16.msra.mxu1 %v3848_v27  ;;  %v3922_v19 = vld [vmem:[#allocation5 + $0x66c] ss:$16 sps:$4 sm:$0xff]   ;;  %v3917_v27 = vld [vmem:[#allocation5 + $0x660] ss:$16 sps:$4 sm:$0xff]  }
 0x3c6   :  { %3118 = vmatprep.subr.bf16.mxu0 %v3853_v11  ;;  %3204 = vmatprep.subr.bf16.mxu1 %v3856_v28  ;;  %v3920_v11 = vld [vmem:[#allocation5 + $0x668] ss:$16 sps:$4 sm:$0xff]   ;;  %v3925_v28 = vld [vmem:[#allocation5 + $0x684] ss:$16 sps:$4 sm:$0xff]  }
 0x3c9   :  { %3119 = vmatpush1.bf16.msra.mxu0 %v3851_v4  ;;  %3205 = vmatpush1.bf16.msra.mxu1 %v3854_v5  ;;  %v3928_v4 = vld [vmem:[#allocation5 + $0x68c] ss:$16 sps:$4 sm:$0xff]   ;;  %v3923_v5 = vld [vmem:[#allocation5 + $0x680] ss:$16 sps:$4 sm:$0xff]  }
 0x3ca   :  { %3120 = vmatprep.subr.bf16.mxu0 %v3859_v20  ;;  %3206 = vmatprep.subr.bf16.mxu1 %v3862_v7  ;;  %v3926_v20 = vld [vmem:[#allocation5 + $0x688] ss:$16 sps:$4 sm:$0xff]   ;;  %v3931_v7 = vld [vmem:[#allocation5 + $0x6a4] ss:$16 sps:$4 sm:$0xff]  }
 0x3cd   :  { %3121 = vmatpush1.bf16.msra.mxu0 %v3857_v26  ;;  %3207 = vmatpush1.bf16.msra.mxu1 %v3860_v40  ;;  %v3934_v26 = vld [vmem:[#allocation5 + $0x6ac] ss:$16 sps:$4 sm:$0xff]   ;;  %v3929_v40 = vld [vmem:[#allocation5 + $0x6a0] ss:$16 sps:$4 sm:$0xff]  }
 0x3ce   :  { %3122 = vmatprep.subr.bf16.mxu0 %v3865_v50  ;;  %3208 = vmatprep.subr.bf16.mxu1 %v3868_v38  ;;  %v3932_v50 = vld [vmem:[#allocation5 + $0x6a8] ss:$16 sps:$4 sm:$0xff]   ;;  %v3937_v38 = vld [vmem:[#allocation5 + $0x6c4] ss:$16 sps:$4 sm:$0xff]  }
 0x3d1   :  { %3123 = vmatpush1.bf16.msra.mxu0 %v3863_v30  ;;  %3209 = vmatpush1.bf16.msra.mxu1 %v3866_v32  ;;  %v3940_v30 = vld [vmem:[#allocation5 + $0x6cc] ss:$16 sps:$4 sm:$0xff]   ;;  %v3935_v32 = vld [vmem:[#allocation5 + $0x6c0] ss:$16 sps:$4 sm:$0xff]  }
 0x3d2   :  { %3124 = vmatprep.subr.bf16.mxu0 %v3871_v33  ;;  %3210 = vmatprep.subr.bf16.mxu1 %v3874_v18  ;;  %v3938_v33 = vld [vmem:[#allocation5 + $0x6c8] ss:$16 sps:$4 sm:$0xff]   ;;  %v3943_v18 = vld [vmem:[#allocation5 + $0x6e4] ss:$16 sps:$4 sm:$0xff]  }
 0x3d5   :  { %3125 = vmatpush1.bf16.msra.mxu0 %v3869_v22  ;;  %3211 = vmatpush1.bf16.msra.mxu1 %v3872_v34  ;;  %v3946_v22 = vld [vmem:[#allocation5 + $0x6ec] ss:$16 sps:$4 sm:$0xff]   ;;  %v3941_v34 = vld [vmem:[#allocation5 + $0x6e0] ss:$16 sps:$4 sm:$0xff]  }
 0x3d6   :  { %3126 = vmatprep.subr.bf16.mxu0 %v3877_v37  ;;  %3212 = vmatprep.subr.bf16.mxu1 %v3880_v21  ;;  %v3944_v37 = vld [vmem:[#allocation5 + $0x6e8] ss:$16 sps:$4 sm:$0xff]   ;;  %v3949_v21 = vld [vmem:[#allocation5 + $0x704] ss:$16 sps:$4 sm:$0xff]  }
 0x3d9   :  { %3127 = vmatpush1.bf16.msra.mxu0 %v3875_v36  ;;  %3213 = vmatpush1.bf16.msra.mxu1 %v3878_v25  ;;  %v3952_v36 = vld [vmem:[#allocation5 + $0x70c] ss:$16 sps:$4 sm:$0xff]   ;;  %v3947_v25 = vld [vmem:[#allocation5 + $0x700] ss:$16 sps:$4 sm:$0xff]  }
 0x3da   :  { %3128 = vmatprep.subr.bf16.mxu0 %v3883_v39  ;;  %3214 = vmatprep.subr.bf16.mxu1 %v3886_v41  ;;  %v3950_v39 = vld [vmem:[#allocation5 + $0x708] ss:$16 sps:$4 sm:$0xff]   ;;  %v3955_v41 = vld [vmem:[#allocation5 + $0x724] ss:$16 sps:$4 sm:$0xff]  }
 0x3dd   :  { %3129 = vmatpush1.bf16.msra.mxu0 %v3881_v43  ;;  %3215 = vmatpush1.bf16.msra.mxu1 %v3884_v44  ;;  %v3958_v43 = vld [vmem:[#allocation5 + $0x72c] ss:$16 sps:$4 sm:$0xff]   ;;  %v3953_v44 = vld [vmem:[#allocation5 + $0x720] ss:$16 sps:$4 sm:$0xff]  }
 0x3de   :  { %3130 = vmatprep.subr.bf16.mxu0 %v3889_v45  ;;  %3216 = vmatprep.subr.bf16.mxu1 %v3892_v46  ;;  %v3956_v45 = vld [vmem:[#allocation5 + $0x728] ss:$16 sps:$4 sm:$0xff]   ;;  %v3961_v46 = vld [vmem:[#allocation5 + $0x744] ss:$16 sps:$4 sm:$0xff]  }
 0x3e1   :  { %3131 = vmatpush1.bf16.msra.mxu0 %v3887_v47  ;;  %3217 = vmatpush1.bf16.msra.mxu1 %v3890_v35  ;;  %v3964_v47 = vld [vmem:[#allocation5 + $0x74c] ss:$16 sps:$4 sm:$0xff]   ;;  %v3959_v35 = vld [vmem:[#allocation5 + $0x740] ss:$16 sps:$4 sm:$0xff]  }
 0x3e2   :  { %3132 = vmatprep.subr.bf16.mxu0 %v3895_v48  ;;  %3218 = vmatprep.subr.bf16.mxu1 %v3898_v52  ;;  %v3967_v48 = vld [vmem:[#allocation5 + $0x764] ss:$16 sps:$4 sm:$0xff]   ;;  %v3965_v52 = vld [vmem:[#allocation5 + $0x760] ss:$16 sps:$4 sm:$0xff]  }
 0x3e5   :  { %3133 = vmatpush1.bf16.msra.mxu0 %v3893_v14  ;;  %3219 = vmatpush1.bf16.msra.mxu1 %v3896_v49  ;;  %v3962_v14 = vld [vmem:[#allocation5 + $0x748] ss:$16 sps:$4 sm:$0xff]   ;;  %v3970_v49 = vld [vmem:[#allocation5 + $0x76c] ss:$16 sps:$4 sm:$0xff]  }
 0x3e6   :  { %3145 = vmatprep.subr.bf16.mxu0 %v3901_v53  ;;  %3231 = vmatprep.subr.bf16.mxu1 %v3904_v54  ;;  %v3968_v53 = vld [vmem:[#allocation5 + $0x768] ss:$16 sps:$4 sm:$0xff]   ;;  %v3973_v54 = vld [vmem:[#allocation5 + $0x784] ss:$16 sps:$4 sm:$0xff]  }
 0x47b   :  { %v2254_v55 = vpop.f32.mrb[8].mxu0  ;;  %v2297_v56 = vpop.f32.mrb[8].mxu1 }
 0x47c   :  { %v2256_v31 = vpop.f32.mrb[9].mxu0  ;;  %v2299_v58 = vpop.f32.mrb[9].mxu1 }
 0x47d   :  { %v2258_v59 = vpop.f32.mrb[10].mxu0  ;;  %v2301_v60 = vpop.f32.mrb[10].mxu1 }
 0x47e   :  { %v2306_v61 = vpack.c.bf16 %v2258_v59, %v2254_v55  ;;  %v4486_v62 = vpack.c.bf16 %v2301_v60, %v2297_v56  ;;  %v2260_v42 = vpop.f32.mrb[11].mxu0  ;;  %v2303_v8 = vpop.f32.mrb[11].mxu1  ;;  %v3976_v55 = vld [vmem:[#allocation5 + $0x78c] ss:$16 sps:$4 sm:$0xff]   ;;  %v3971_v56 = vld [vmem:[#allocation5 + $0x780] ss:$16 sps:$4 sm:$0xff]  }
 0x47f   :  { %v2307_v9 = vpack.c.bf16 %v2260_v42, %v2256_v31  ;;  %v2309_v63 = vpack.c.bf16 %v2303_v8, %v2299_v58  ;;  %v3974_v31 = vld [vmem:[#allocation5 + $0x788] ss:$16 sps:$4 sm:$0xff]   ;;  %v3979_v58 = vld [vmem:[#allocation5 + $0x7a4] ss:$16 sps:$4 sm:$0xff]   ;;  %v3982_v59 = vld [vmem:[#allocation5 + $0x7ac] ss:$16 sps:$4 sm:$0xff]  }
 0x480   :  { %v3977_v60 = vld [vmem:[#allocation5 + $0x7a0] ss:$16 sps:$4 sm:$0xff]   ;;  %v3985_v42 = vld [vmem:[#allocation5 + $0x7c4] ss:$16 sps:$4 sm:$0xff]   ;;  %v3988_v8 = vld [vmem:[#allocation5 + $0x7cc] ss:$16 sps:$4 sm:$0xff]  }
 0x481   :  { %3134 = vmatprep.mubr.bf16.mxu0 %v2307_v9  ;;  %3220 = vmatprep.mubr.bf16.mxu1 %v2307_v9  ;;  %v3983_v9 = vld [vmem:[#allocation5 + $0x7c0] ss:$16 sps:$4 sm:$0xff]  }
 0x482   :  { %3135 = vmatmul.mubr.bf16.vlgmr.msra.gmra.mrb[12].mxu0 %v2306_v61  ;;  %3221 = vmatmul.mubr.bf16.vlgmr.msra.gmra.mrb[12].mxu1 %v2306_v61  ;;  %v3980_v61 = vld [vmem:[#allocation5 + $0x7a8] ss:$16 sps:$4 sm:$0xff]  }
 0x483   :  { %3146 = vmatpush1.bf16.msra.mxu0 %v3899_v2  ;;  %3232 = vmatpush1.bf16.msra.mxu1 %v3902_v3  ;;  %v3991_v2 = vld [vmem:[#allocation5 + $0x7e4] ss:$16 sps:$4 sm:$0xff]   ;;  %v3994_v3 = vld [vmem:[#allocation5 + $0x7ec] ss:$16 sps:$4 sm:$0xff]  }
 0x484   :  { %3177 = vmatprep.mubr.bf16.mxu0 %v2309_v63  ;;  %3263 = vmatprep.mubr.bf16.mxu1 %v2309_v63  ;;  %v3986_v63 = vld [vmem:[#allocation5 + $0x7c8] ss:$16 sps:$4 sm:$0xff]  }
 0x485   :  { %3147 = vmatprep.subr.bf16.mxu0 %v3907_v57  ;;  %3233 = vmatprep.subr.bf16.mxu1 %v3910_v10  ;;  %v3989_v57 = vld [vmem:[#allocation5 + $0x7e0] ss:$16 sps:$4 sm:$0xff]   ;;  %v3992_v10 = vld [vmem:[#allocation5 + $0x7e8] ss:$16 sps:$4 sm:$0xff]  }
 0x487   :  { %3148 = vmatpush1.bf16.msra.mxu0 %v3905_v12  ;;  %3234 = vmatpush1.bf16.msra.mxu1 %v3908_v6  ;;  %v3440_v12 = vld [vmem:[%s4520_s5 + $0x4] sm:$0xf]  ;;  %s4047_s5 = scalar_lea.vmem %s3288_s11, 1024 }
 0x488   :  { %3149 = vmatprep.subr.bf16.mxu0 %v3913_v15  ;;  %3235 = vmatprep.subr.bf16.mxu1 %v3916_v16  ;;  %v2445_v6 = vrot.slane %v3440_v12, %v4175_v24  ;;  %v2453_v15 = vrot.slane %v3440_v12, %v1160_v13  ;;  %v2449_v16 = vrot.slane %v3440_v12, %v1156_v51  ;;  %p4048_p2 = scmp.ne.s32.totalorder %s3288_s11, %s4047_s5  ;;  %p4053_p4 = scmp.lt.s32.totalorder %s4047_s5, %s4047_s5 }
 0x48a   :  { %p4054_p5 = por %p4053_p4, %p4052_p3 }
 0x48b   :  { %3150 = vmatpush1.bf16.msra.mxu0 %v3911_v17  ;;  %3236 = vmatpush1.bf16.msra.mxu1 %v3914_v29  ;;  %v2457_v17 = vrot.slane %v3440_v12, %v1164_v0 }
 0x48c   :  { %3151 = vmatprep.subr.bf16.mxu0 %v3919_v23  ;;  %3237 = vmatprep.subr.bf16.mxu1 %v3922_v19  ;;  %p4055_p6 = pnand %p4054_p5, %p4048_p2 }
 0x48f   :  { %3152 = vmatpush1.bf16.msra.mxu0 %v3917_v27  ;;  %3238 = vmatpush1.bf16.msra.mxu1 %v3920_v11 }
 0x490   :  { %3153 = vmatprep.subr.bf16.mxu0 %v3925_v28  ;;  %3239 = vmatprep.subr.bf16.mxu1 %v3928_v4 }
 0x493   :  { %3154 = vmatpush1.bf16.msra.mxu0 %v3923_v5  ;;  %3240 = vmatpush1.bf16.msra.mxu1 %v3926_v20 }
 0x494   :  { %3155 = vmatprep.subr.bf16.mxu0 %v3931_v7  ;;  %3241 = vmatprep.subr.bf16.mxu1 %v3934_v26 }
 0x497   :  { %3156 = vmatpush1.bf16.msra.mxu0 %v3929_v40  ;;  %3242 = vmatpush1.bf16.msra.mxu1 %v3932_v50 }
 0x498   :  { %3157 = vmatprep.subr.bf16.mxu0 %v3937_v38  ;;  %3243 = vmatprep.subr.bf16.mxu1 %v3940_v30 }
 0x49b   :  { %3158 = vmatpush1.bf16.msra.mxu0 %v3935_v32  ;;  %3244 = vmatpush1.bf16.msra.mxu1 %v3938_v33 }
 0x49c   :  { %3159 = vmatprep.subr.bf16.mxu0 %v3943_v18  ;;  %3245 = vmatprep.subr.bf16.mxu1 %v3946_v22 }
 0x49f   :  { %3160 = vmatpush1.bf16.msra.mxu0 %v3941_v34  ;;  %3246 = vmatpush1.bf16.msra.mxu1 %v3944_v37 }
 0x4a0   :  { %3161 = vmatprep.subr.bf16.mxu0 %v3949_v21  ;;  %3247 = vmatprep.subr.bf16.mxu1 %v3952_v36 }
 0x4a3   :  { %3162 = vmatpush1.bf16.msra.mxu0 %v3947_v25  ;;  %3248 = vmatpush1.bf16.msra.mxu1 %v3950_v39 }
 0x4a4   :  { %3163 = vmatprep.subr.bf16.mxu0 %v3955_v41  ;;  %3249 = vmatprep.subr.bf16.mxu1 %v3958_v43 }
 0x4a7   :  { %3164 = vmatpush1.bf16.msra.mxu0 %v3953_v44  ;;  %3250 = vmatpush1.bf16.msra.mxu1 %v3956_v45 }
 0x4a8   :  { %3165 = vmatprep.subr.bf16.mxu0 %v3961_v46  ;;  %3251 = vmatprep.subr.bf16.mxu1 %v3964_v47 }
 0x4ab   :  { %3166 = vmatpush1.bf16.msra.mxu0 %v3959_v35  ;;  %3252 = vmatpush1.bf16.msra.mxu1 %v3962_v14 }
 0x4ac   :  { %3167 = vmatprep.subr.bf16.mxu0 %v3967_v48  ;;  %3253 = vmatprep.subr.bf16.mxu1 %v3970_v49 }
 0x4af   :  { %3168 = vmatpush1.bf16.msra.mxu0 %v3965_v52  ;;  %3254 = vmatpush1.bf16.msra.mxu1 %v3968_v53 }
 0x4b0   :  { %3169 = vmatprep.subr.bf16.mxu0 %v3973_v54  ;;  %3255 = vmatprep.subr.bf16.mxu1 %v3976_v55 }
 0x4b3   :  { %3170 = vmatpush1.bf16.msra.mxu0 %v3971_v56  ;;  %3256 = vmatpush1.bf16.msra.mxu1 %v3974_v31 }
 0x4b4   :  { %3171 = vmatprep.subr.bf16.mxu0 %v3979_v58  ;;  %3257 = vmatprep.subr.bf16.mxu1 %v3982_v59 }
 0x4b7   :  { %3172 = vmatpush1.bf16.msra.mxu0 %v3977_v60  ;;  %3258 = vmatpush1.bf16.msra.mxu1 %v3980_v61 }
 0x4b8   :  { %3173 = vmatprep.subr.bf16.mxu0 %v3985_v42  ;;  %3259 = vmatprep.subr.bf16.mxu1 %v3988_v8 }
 0x4bb   :  { %3174 = vmatpush1.bf16.msra.mxu0 %v3983_v9  ;;  %3260 = vmatpush1.bf16.msra.mxu1 %v3986_v63 }
 0x4bc   :  { %3175 = vmatprep.subr.bf16.mxu0 %v3991_v2  ;;  %3261 = vmatprep.subr.bf16.mxu1 %v3994_v3 }
 0x4bf   :  { %3176 = vmatpush1.bf16.msra.mxu0 %v3989_v57  ;;  %3262 = vmatpush1.bf16.msra.mxu1 %v3992_v10 }
 0x4c2   :  { %3178 = vmatmul.mubr.bf16.vlgmr.msra.gmra.mrb[12].mxu0 %v4486_v62  ;;  %3264 = vmatmul.mubr.bf16.vlgmr.msra.gmra.mrb[12].mxu1 %v4486_v62 }
 0x595   :  { %v3179_v29 = vpop.f32.mrb[12].mxu0  ;;  %v3265_v23 = vpop.f32.mrb[12].mxu1 }
 0x596   :  { %v3577_v19 = vadd.f32 %v3179_v29, %v2445_v6  ;;  %v3581_v27 = vadd.f32 %v3265_v23, %v2453_v15  ;;  %v3181_v62 = vpop.f32.mrb[13].mxu0  ;;  %v3267_v11 = vpop.f32.mrb[13].mxu1 }
 0x597   :  { %v3578_v28 = vadd.f32 %v3181_v62, %v2449_v16  ;;  %v3582_v4 = vadd.f32 %v3267_v11, %v2457_v17  ;;  %v3183_v24 = vpop.f32.mrb[14].mxu0  ;;  %v3269_v5 = vpop.f32.mrb[14].mxu1 }
 0x598   :  { %3274 = vst [vmem:[#allocation7] sm:$0xff] %v3577_v19  ;;  %3276 = vst [vmem:[#allocation7 + $0x10] sm:$0xff] %v3581_v27  ;;  %v3579_v13 = vadd.f32 %v3183_v24, %v2445_v6  ;;  %v3583_v20 = vadd.f32 %v3269_v5, %v2453_v15  ;;  %v3185_v51 = vpop.f32.mrb[15].mxu0  ;;  %v3271_v7 = vpop.f32.mrb[15].mxu1 }
 0x599   :  { %3275 = vst [vmem:[#allocation7 + $0x8] sm:$0xff] %v3578_v28  ;;  %3277 = vst [vmem:[#allocation7 + $0x18] sm:$0xff] %v3582_v4  ;;  %v3580_v1 = vadd.f32 %v3185_v51, %v2449_v16  ;;  %v3584_v0 = vadd.f32 %v3271_v7, %v2457_v17 }
 0x59a   :  { %3278 = vst [vmem:[#allocation7 + $0x20] sm:$0xff] %v3579_v13  ;;  %3280 = vst [vmem:[#allocation7 + $0x30] sm:$0xff] %v3583_v20 }
 0x59b   :  { %3279 = vst [vmem:[#allocation7 + $0x28] sm:$0xff] %v3580_v1  ;;  %3281 = vst [vmem:[#allocation7 + $0x38] sm:$0xff] %v3584_v0 }
 0x59c   :  { %4058 = shalt.err (!%p4055_p6)
}
 0x59d   :  { %s4059_s14 = scalar_lea.hbm %s4521_s6, 1024 }
 0x59e   :  { %p4060_p7 = scmp.ne.s32.totalorder %s4521_s6, %s4059_s14  ;;  %p4063_p8 = scmp.lt.u32.totalorder %s4059_s14, %s4521_s6 }
 0x5a0   :  { %p4065_p9 = pnand %p4063_p8, %p4060_p7 }
 0x5a2   :  { %4068 = shalt.err (!%p4065_p9)
}
 0x5a3   :  { %3293 = dma.vmem_to_hbm [thread:$0]  %s3288_s11, 1024, %s4521_s6, [#allocation4], %s4076_s7, %s4076_s7, %s4077_s8  }
 0x5a4   :  { %4073 = dma.done.wait [#allocation4], 1024  }
 0x5a5   :  { %4074 = vsyncadd [#allocation4], 4294966272 }
 0x5a6   :  { %3297 = vsyncpa [#allocation3], 1 }
 0x5a7   :  { %3298 = vsyncpa [#allocation6], 1 }
 0x5a8   :  { %3299 = vsyncpa [#allocation4], 1 }

</bundles_post_ra>
